<compile_context>
chip_gen: v5e
topology: v5e:2x2
jax: 0.10.0
libtpu: 0.0.40
codegen_flags: <defaults>
</compile_context>

<pallas_src>
import functools

import jax
import jax.numpy as jnp
from jax import lax
from jax.experimental import pallas as pl
from jax.experimental.pallas import tpu as pltpu


def _wn_kernel(x_ref, mask_ref, add_ref, w_in_ref, w_rs_ref, b_rs_ref, o_ref, *,
               n_layers, kernel_size, dilation_rate, hidden, seq_len):
    """One grid step == one batch element.

    x_ref    : (1, C, T)     f32 input tile (T on lanes, lane-dense)
    mask_ref : (1, 1, T)     f32 x_mask tile
    add_ref  : (1, 2C, L)    f32 per-layer conv-bias + conditioning (this batch)
    w_in_ref : (L, 2C, K*C)  bf16 fused dilated-conv tap weights (resident)
    w_rs_ref : (L, 2C, C)    bf16 res/skip 1x1 weights (last layer packed in skip rows)
    b_rs_ref : (2C, L)       f32 res/skip biases
    o_ref    : (1, C, T)     output tile
    """
    C, K, L, T = hidden, kernel_size, n_layers, seq_len
    f32, bf16 = jnp.float32, jnp.bfloat16

    x = x_ref[0].astype(f32)                    # (C, T) residual state
    mask = mask_ref[0].astype(f32)              # (1, T)
    add = add_ref[0].astype(f32)                # (2C, L)
    b_rs = b_rs_ref[...].astype(f32)            # (2C, L)
    output = jnp.zeros((C, T), f32)

    # Hoisted "same"-padding edge masks: one (1, T) 0/1 mask per distinct offset.
    offsets = sorted({(k - K // 2) * (dilation_rate ** i)
                      for i in range(L) for k in range(K)} - {0})
    t_idx = lax.broadcasted_iota(jnp.int32, (1, T), 1)
    edge = {off: ((t_idx < T - off) if off > 0 else (t_idx >= -off)).astype(f32)
            for off in offsets}

    for i in range(L):                          # static unroll (L is small)
        dilation = dilation_rate ** i

        # ---- dilated conv: K shifted copies -> ONE (2C,K*C)@(K*C,T) MXU matmul ----
        taps = []
        for k in range(K):
            off = (k - K // 2) * dilation
            if off == 0:
                taps.append(x)
            else:
                # taps[k][:, t] = x[:, t + off], zero outside [0, T) ("same" pad)
                taps.append(pltpu.roll(x, shift=(-off) % T, axis=1) * edge[off])
        xs = jnp.concatenate(taps, axis=0).astype(bf16)               # (K*C, T)
        x_in = jnp.dot(w_in_ref[i], xs, preferred_element_type=f32)   # (2C, T)
        x_in = x_in + add[:, i:i + 1]                                 # bias + cond

        # ---- gated activation (kept f32: v5e VPU/EUP have no bf16 path) ----
        acts = jnp.tanh(x_in[:C, :]) * jax.nn.sigmoid(x_in[C:, :])    # (C, T)
        # TODO(synk): training-time dropout (p_dropout > 0) not implemented
        # (module default p_dropout=0 / eval => identity).

        # ---- res/skip 1x1 conv ----
        rs = jnp.dot(w_rs_ref[i], acts.astype(bf16),
                     preferred_element_type=f32) + b_rs[:, i:i + 1]   # (2C, T)

        if i < L - 1:
            x = (x + rs[:C, :]) * mask           # residual path
        output = output + rs[C:, :]              # skip path

    o_ref[0] = (output * mask).astype(o_ref.dtype)


def _vmem_limit_bytes():
    """Generation-aware scoped-VMEM budget (~75% of physical)."""
    cap = None
    try:
        info = pltpu.get_tpu_info()
        cap = getattr(info, "vmem_capacity_bytes", None)
    except Exception:
        cap = None
    if not cap:
        cap = 64 * 1024 * 1024   # conservative fallback: fits every TPU generation
    return int(cap) * 3 // 4


def wn_forward(x, x_mask, g, eff, *, hidden_channels, kernel_size,
               dilation_rate, n_layers, gin_channels):
    """x: (B, C, T), x_mask: (B, 1, T), g: (B, gin_channels).

    `eff` holds the *effective* (post weight-norm) parameters:
      in_w[i]: (2C, C, K), in_b[i]: (2C,)
      rs_w[i]: (2C or C, C, 1), rs_b[i]: (2C or C,)
      cond_w : (2C*L, gin), cond_b: (2C*L,)
    """
    B, C, T0 = x.shape
    assert C == hidden_channels
    L, K = n_layers, kernel_size
    f32, bf16 = jnp.float32, jnp.bfloat16

    # ---- pad T to a lane-dense multiple of 128 (exactly equivalent: zero x/mask) ----
    T = ((T0 + 127) // 128) * 128
    if T != T0:
        x = jnp.pad(x, ((0, 0), (0, 0), (0, T - T0)))
        x_mask = jnp.pad(x_mask, ((0, 0), (0, 0), (0, T - T0)))

    # ---- hoisted (XLA) parameter packing ----
    # fused dilated-conv weights -> (L, 2C, K*C) bf16 (taps along the contraction dim)
    w_in = jnp.stack(
        [jnp.transpose(eff["in_w"][i], (0, 2, 1)).reshape(2 * C, K * C)
         for i in range(L)], axis=0).astype(bf16)

    # res/skip 1x1 weights -> (L, 2C, C) bf16; the last layer's (C,C) weight is packed
    # into the skip rows (C:2C) with zero res rows so the kernel body is uniform.
    w_rs_list, b_rs_list = [], []
    for i in range(L):
        w = eff["rs_w"][i][:, :, 0].astype(f32)
        b = eff["rs_b"][i].astype(f32)
        if i == L - 1:
            w = jnp.concatenate([jnp.zeros((C, C), f32), w], axis=0)
            b = jnp.concatenate([jnp.zeros((C,), f32), b], axis=0)
        w_rs_list.append(w)
        b_rs_list.append(b)
    w_rs = jnp.stack(w_rs_list, axis=0).astype(bf16)          # (L, 2C, C)
    b_rs = jnp.stack(b_rs_list, axis=1)                       # (2C, L) f32

    # conv bias + conditioning: tiny (B,E)x(E,2CL) matmul hoisted out of the kernel.
    b_in = jnp.stack([eff["in_b"][i].astype(f32) for i in range(L)], axis=0)  # (L, 2C)
    add = jnp.broadcast_to(b_in[None], (B, L, 2 * C))
    if gin_channels != 0:
        gproj = g.astype(f32) @ eff["cond_w"].astype(f32).T + eff["cond_b"].astype(f32)
        add = add + gproj.reshape(B, L, 2 * C)
    add = jnp.transpose(add, (0, 2, 1))                       # (B, 2C, L)

    kernel = functools.partial(
        _wn_kernel, n_layers=L, kernel_size=K, dilation_rate=dilation_rate,
        hidden=C, seq_len=T)

    out = pl.pallas_call(
        kernel,
        out_shape=jax.ShapeDtypeStruct((B, C, T), x.dtype),
        grid_spec=pltpu.PrefetchScalarGridSpec(
            num_scalar_prefetch=0,
            grid=(B,),
            in_specs=[
                pl.BlockSpec((1, C, T), lambda b: (b, 0, 0)),            # x
                pl.BlockSpec((1, 1, T), lambda b: (b, 0, 0)),            # x_mask
                pl.BlockSpec((1, 2 * C, L), lambda b: (b, 0, 0)),        # bias + cond
                pl.BlockSpec((L, 2 * C, K * C), lambda b: (0, 0, 0),     # in-conv taps
                             pipeline_mode=pl.Buffered(1)),              # (resident, 1x buf)
                pl.BlockSpec((L, 2 * C, C), lambda b: (0, 0, 0),         # res/skip weights
                             pipeline_mode=pl.Buffered(1)),
                pl.BlockSpec((2 * C, L), lambda b: (0, 0),               # res/skip biases
                             pipeline_mode=pl.Buffered(1)),
            ],
            out_specs=pl.BlockSpec((1, C, T), lambda b: (b, 0, 0)),
        ),
        compiler_params=pltpu.CompilerParams(
            dimension_semantics=("parallel",),
            vmem_limit_bytes=_vmem_limit_bytes(),
        ),
    )(x, x_mask.astype(x.dtype), add, w_in, w_rs, b_rs)

    return out[:, :, :T0] if T != T0 else out


# ---------------------------------------------------------------------------
# weight_norm at forward time resolves to an effective weight w = g * v / ||v||
# (norm over all dims but dim 0). Resolved once, outside the kernel.
def _wn_conv_weight(v, g):      # v: (out, in, k), g: (out,)
    norm = jnp.sqrt(jnp.sum(v * v, axis=(1, 2), keepdims=True))
    return v * (g[:, None, None] / norm)


def _wn_linear_weight(v, g):    # v: (out, in), g: (out,)
    norm = jnp.sqrt(jnp.sum(v * v, axis=1, keepdims=True))
    return v * (g[:, None] / norm)


def _reference(x, x_mask, g, eff, *, hidden, kernel_size, dilation_rate,
               n_layers, gin_channels, compute_dtype=jnp.float32):
    """Pure-JAX replica of PyTorch WN.forward. `compute_dtype` sets the matmul
    operand dtype (f32 = exact reference, bf16 = mirrors the kernel's MXU casts);
    accumulation and all elementwise math stay f32 in both cases."""
    C, K, L = hidden, kernel_size, n_layers
    out = jnp.zeros_like(x)
    if gin_channels != 0:
        gp = g @ eff["cond_w"].T + eff["cond_b"]
    for i in range(L):
        dilation = dilation_rate ** i
        pad = (K * dilation - dilation) // 2
        x_in = lax.conv_general_dilated(
            x.astype(compute_dtype), eff["in_w"][i].astype(compute_dtype),
            window_strides=(1,), padding=[(pad, pad)], rhs_dilation=(dilation,),
            dimension_numbers=("NCH", "OIH", "NCH"),
            preferred_element_type=jnp.float32,
            precision=lax.Precision.HIGHEST) + eff["in_b"][i][None, :, None]
        if gin_channels != 0:
            x_in = x_in + gp[:, i * 2 * C:(i + 1) * 2 * C][:, :, None]
        acts = jnp.tanh(x_in[:, :C]) * jax.nn.sigmoid(x_in[:, C:])
        rs = lax.conv_general_dilated(
            acts.astype(compute_dtype), eff["rs_w"][i].astype(compute_dtype),
            window_strides=(1,), padding=[(0, 0)],
            dimension_numbers=("NCH", "OIH", "NCH"),
            preferred_element_type=jnp.float32,
            precision=lax.Precision.HIGHEST) + eff["rs_b"][i][None, :, None]
        if i < L - 1:
            x = (x + rs[:, :C]) * x_mask
            out = out + rs[:, C:]
        else:
            out = out + rs
    return out * x_mask


if __name__ == "__main__":
    # Small shapes consistent with the module. T is deliberately not a multiple
    # of 128 to exercise the lane-dense padding path.
    B, C, T = 2, 32, 120          # batch, hidden_channels, time
    K, DR, L, GIN = 3, 2, 3, 16   # kernel_size, dilation_rate, n_layers, gin_channels

    keys = iter(jax.random.split(jax.random.PRNGKey(0), 40))

    x = jax.random.normal(next(keys), (B, C, T), dtype=jnp.float32)
    lengths = jnp.array([T, T - 28], dtype=jnp.int32)
    x_mask = (jnp.arange(T)[None, None, :] < lengths[:, None, None]).astype(jnp.float32)
    g = jax.random.normal(next(keys), (B, GIN), dtype=jnp.float32)

    in_w, in_b, rs_w, rs_b = [], [], [], []
    for i in range(L):
        v = 0.1 * jax.random.normal(next(keys), (2 * C, C, K), dtype=jnp.float32)
        gw = jax.random.uniform(next(keys), (2 * C,), minval=0.5, maxval=1.5,
                                dtype=jnp.float32)
        in_w.append(_wn_conv_weight(v, gw))
        in_b.append(0.1 * jax.random.normal(next(keys), (2 * C,), dtype=jnp.float32))

        rs_ch = 2 * C if i < L - 1 else C
        v = 0.1 * jax.random.normal(next(keys), (rs_ch, C, 1), dtype=jnp.float32)
        gw = jax.random.uniform(next(keys), (rs_ch,), minval=0.5, maxval=1.5,
                                dtype=jnp.float32)
        rs_w.append(_wn_conv_weight(v, gw))
        rs_b.append(0.1 * jax.random.normal(next(keys), (rs_ch,), dtype=jnp.float32))

    v = 0.1 * jax.random.normal(next(keys), (2 * C * L, GIN), dtype=jnp.float32)
    gw = jax.random.uniform(next(keys), (2 * C * L,), minval=0.5, maxval=1.5,
                            dtype=jnp.float32)
    cond_w = _wn_linear_weight(v, gw)
    cond_b = 0.1 * jax.random.normal(next(keys), (2 * C * L,), dtype=jnp.float32)

    eff = {"in_w": in_w, "in_b": in_b, "rs_w": rs_w, "rs_b": rs_b,
           "cond_w": cond_w, "cond_b": cond_b}

    out = wn_forward(x, x_mask, g, eff, hidden_channels=C, kernel_size=K,
                     dilation_rate=DR, n_layers=L, gin_channels=GIN)
    out = jax.block_until_ready(out)
    assert out.shape == (B, C, T)

    # Tight check vs. a reference with identical bf16 operand-cast points.
    ref16 = _reference(x, x_mask, g, eff, hidden=C, kernel_size=K,
                       dilation_rate=DR, n_layers=L, gin_channels=GIN,
                       compute_dtype=jnp.bfloat16)
    # Loose check vs. the exact f32 reference (bf16 MXU operand rounding).
    ref32 = _reference(x, x_mask, g, eff, hidden=C, kernel_size=K,
                       dilation_rate=DR, n_layers=L, gin_channels=GIN,
                       compute_dtype=jnp.float32)

    err16 = float(jnp.max(jnp.abs(out - ref16)))
    err32 = float(jnp.max(jnp.abs(out - ref32)))
    assert jnp.allclose(out, ref16, atol=2e-3, rtol=2e-3), err16
    assert jnp.allclose(out, ref32, atol=3e-2, rtol=3e-2), err32

    print("KERNEL_OK")
</pallas_src>

<mosaic_0001>
module attributes {stable_mosaic.version = 11 : i64} {
  func.func @_wn_kernel(%arg0: i32, %arg1: memref<1x32x128xf32, #tpu.memory_space<vmem>>, %arg2: memref<1x1x128xf32, #tpu.memory_space<vmem>>, %arg3: memref<1x64x3xf32, #tpu.memory_space<vmem>>, %arg4: memref<3x64x96xbf16, #tpu.memory_space<vmem>>, %arg5: memref<3x64x32xbf16, #tpu.memory_space<vmem>>, %arg6: memref<64x3xf32, #tpu.memory_space<vmem>>, %arg7: memref<1x32x128xf32, #tpu.memory_space<vmem>>) attributes {dimension_semantics = [#tpu.dimension_semantics<parallel>], iteration_bounds = array<i64: 2>, scalar_prefetch = 0 : i64, scratch_operands = 0 : i64, tpu.core_type = #tpu.core_type<tc>, window_params = [{transform_indices = @transform_0, window_bounds = array<i64: 1, 32, 128>}, {transform_indices = @transform_1, window_bounds = array<i64: 1, 1, 128>}, {transform_indices = @transform_2, window_bounds = array<i64: 1, 64, 3>}, {pipeline_mode = #tpu.pipeline_mode<synchronous>, transform_indices = @transform_3, window_bounds = array<i64: 3, 64, 96>}, {pipeline_mode = #tpu.pipeline_mode<synchronous>, transform_indices = @transform_4, window_bounds = array<i64: 3, 64, 32>}, {pipeline_mode = #tpu.pipeline_mode<synchronous>, transform_indices = @transform_5, window_bounds = array<i64: 64, 3>}, {transform_indices = @transform_6, window_bounds = array<i64: 1, 32, 128>}]} {
    %c0 = arith.constant 0 : index
    %c0_0 = arith.constant 0 : index
    %c0_1 = arith.constant 0 : index
    %0 = vector.load %arg1[%c0, %c0_0, %c0_1] : memref<1x32x128xf32, #tpu.memory_space<vmem>>, vector<1x32x128xf32>
    %1 = vector.shape_cast %0 : vector<1x32x128xf32> to vector<32x128xf32>
    %c0_2 = arith.constant 0 : index
    %c0_3 = arith.constant 0 : index
    %c0_4 = arith.constant 0 : index
    %2 = vector.load %arg2[%c0_2, %c0_3, %c0_4] : memref<1x1x128xf32, #tpu.memory_space<vmem>>, vector<1x1x128xf32>
    %3 = vector.shape_cast %2 : vector<1x1x128xf32> to vector<1x128xf32>
    %c0_5 = arith.constant 0 : index
    %c0_6 = arith.constant 0 : index
    %c0_7 = arith.constant 0 : index
    %4 = vector.load %arg3[%c0_5, %c0_6, %c0_7] : memref<1x64x3xf32, #tpu.memory_space<vmem>>, vector<1x64x3xf32>
    %5 = vector.shape_cast %4 : vector<1x64x3xf32> to vector<64x3xf32>
    %c0_8 = arith.constant 0 : index
    %c0_9 = arith.constant 0 : index
    %6 = vector.load %arg6[%c0_8, %c0_9] : memref<64x3xf32, #tpu.memory_space<vmem>>, vector<64x3xf32>
    %cst = arith.constant 0.000000e+00 : f32
    %7 = vector.broadcast %cst : f32 to vector<32x128xf32>
    %8 = tpu.iota {dimensions = array<i32: 1>} : vector<1x128xi32>
    %c4_i32 = arith.constant 4 : i32
    %9 = vector.broadcast %c4_i32 : i32 to vector<1x128xi32>
    %10 = arith.cmpi sge, %8, %9 : vector<1x128xi32>
    %11 = arith.extui %10 : vector<1x128xi1> to vector<1x128xi32>
    %12 = arith.sitofp %11 : vector<1x128xi32> to vector<1x128xf32>
    %c2_i32 = arith.constant 2 : i32
    %13 = vector.broadcast %c2_i32 : i32 to vector<1x128xi32>
    %14 = arith.cmpi sge, %8, %13 : vector<1x128xi32>
    %15 = arith.extui %14 : vector<1x128xi1> to vector<1x128xi32>
    %16 = arith.sitofp %15 : vector<1x128xi32> to vector<1x128xf32>
    %c1_i32 = arith.constant 1 : i32
    %17 = vector.broadcast %c1_i32 : i32 to vector<1x128xi32>
    %18 = arith.cmpi sge, %8, %17 : vector<1x128xi32>
    %19 = arith.extui %18 : vector<1x128xi1> to vector<1x128xi32>
    %20 = arith.sitofp %19 : vector<1x128xi32> to vector<1x128xf32>
    %c127_i32 = arith.constant 127 : i32
    %21 = vector.broadcast %c127_i32 : i32 to vector<1x128xi32>
    %22 = arith.cmpi slt, %8, %21 : vector<1x128xi32>
    %23 = arith.extui %22 : vector<1x128xi1> to vector<1x128xi32>
    %24 = arith.sitofp %23 : vector<1x128xi32> to vector<1x128xf32>
    %c126_i32 = arith.constant 126 : i32
    %25 = vector.broadcast %c126_i32 : i32 to vector<1x128xi32>
    %26 = arith.cmpi slt, %8, %25 : vector<1x128xi32>
    %27 = arith.extui %26 : vector<1x128xi1> to vector<1x128xi32>
    %28 = arith.sitofp %27 : vector<1x128xi32> to vector<1x128xf32>
    %c124_i32 = arith.constant 124 : i32
    %29 = vector.broadcast %c124_i32 : i32 to vector<1x128xi32>
    %30 = arith.cmpi slt, %8, %29 : vector<1x128xi32>
    %31 = arith.extui %30 : vector<1x128xi1> to vector<1x128xi32>
    %32 = arith.sitofp %31 : vector<1x128xi32> to vector<1x128xf32>
    %c1_i32_10 = arith.constant 1 : i32
    %33 = tpu.dynamic_rotate %1 by %c1_i32_10 dim 1 : vector<32x128xf32>, i32 -> vector<32x128xf32>
    %34 = vector.broadcast %20 : vector<1x128xf32> to vector<32x128xf32>
    %35 = arith.mulf %33, %34 : vector<32x128xf32>
    %c127_i32_11 = arith.constant 127 : i32
    %36 = tpu.dynamic_rotate %1 by %c127_i32_11 dim 1 : vector<32x128xf32>, i32 -> vector<32x128xf32>
    %37 = vector.broadcast %24 : vector<1x128xf32> to vector<32x128xf32>
    %38 = arith.mulf %36, %37 : vector<32x128xf32>
    %39 = tpu.concatenate %35, %1, %38 in 0 : vector<32x128xf32>, vector<32x128xf32>, vector<32x128xf32> -> vector<96x128xf32>
    %40 = arith.truncf %39 : vector<96x128xf32> to vector<96x128xbf16>
    %c0_12 = arith.constant 0 : index
    %c0_13 = arith.constant 0 : index
    %c0_14 = arith.constant 0 : index
    %41 = vector.load %arg4[%c0_12, %c0_13, %c0_14] : memref<3x64x96xbf16, #tpu.memory_space<vmem>>, vector<1x64x96xbf16>
    %42 = vector.shape_cast %41 : vector<1x64x96xbf16> to vector<64x96xbf16>
    %cst_15 = arith.constant dense<0.000000e+00> : vector<64x128xf32>
    %43 = tpu.matmul %42, %40, %cst_15 {dimension_numbers = #tpu.dot_dimension_numbers<[1], [0], [0], [1], [0, 0, 1, 1], [], []>} : vector<64x96xbf16>, vector<96x128xbf16>, vector<64x128xf32> -> vector<64x128xf32>
    %44 = vector.extract_strided_slice %5 {offsets = [0, 0], sizes = [64, 1], strides = [1, 1]} : vector<64x3xf32> to vector<64x1xf32>
    %45 = vector.broadcast %44 : vector<64x1xf32> to vector<64x128xf32>
    %46 = arith.addf %43, %45 : vector<64x128xf32>
    %47 = vector.extract_strided_slice %46 {offsets = [0, 0], sizes = [32, 128], strides = [1, 1]} : vector<64x128xf32> to vector<32x128xf32>
    %48 = math.tanh %47 : vector<32x128xf32>
    %49 = vector.extract_strided_slice %46 {offsets = [32, 0], sizes = [32, 128], strides = [1, 1]} : vector<64x128xf32> to vector<32x128xf32>
    %50 = arith.negf %49 : vector<32x128xf32>
    %51 = math.exp %50 : vector<32x128xf32>
    %cst_16 = arith.constant 1.000000e+00 : f32
    %52 = vector.broadcast %cst_16 : f32 to vector<32x128xf32>
    %53 = arith.addf %52, %51 : vector<32x128xf32>
    %54 = arith.divf %52, %53 : vector<32x128xf32>
    %55 = arith.mulf %48, %54 : vector<32x128xf32>
    %c0_17 = arith.constant 0 : index
    %c0_18 = arith.constant 0 : index
    %c0_19 = arith.constant 0 : index
    %56 = vector.load %arg5[%c0_17, %c0_18, %c0_19] : memref<3x64x32xbf16, #tpu.memory_space<vmem>>, vector<1x64x32xbf16>
    %57 = vector.shape_cast %56 : vector<1x64x32xbf16> to vector<64x32xbf16>
    %58 = arith.truncf %55 : vector<32x128xf32> to vector<32x128xbf16>
    %cst_20 = arith.constant dense<0.000000e+00> : vector<64x128xf32>
    %59 = tpu.matmul %57, %58, %cst_20 {dimension_numbers = #tpu.dot_dimension_numbers<[1], [0], [0], [1], [0, 0, 1, 1], [], []>} : vector<64x32xbf16>, vector<32x128xbf16>, vector<64x128xf32> -> vector<64x128xf32>
    %60 = vector.extract_strided_slice %6 {offsets = [0, 0], sizes = [64, 1], strides = [1, 1]} : vector<64x3xf32> to vector<64x1xf32>
    %61 = vector.broadcast %60 : vector<64x1xf32> to vector<64x128xf32>
    %62 = arith.addf %59, %61 : vector<64x128xf32>
    %63 = vector.extract_strided_slice %62 {offsets = [0, 0], sizes = [32, 128], strides = [1, 1]} : vector<64x128xf32> to vector<32x128xf32>
    %64 = arith.addf %1, %63 : vector<32x128xf32>
    %65 = vector.broadcast %3 : vector<1x128xf32> to vector<32x128xf32>
    %66 = arith.mulf %64, %65 : vector<32x128xf32>
    %67 = vector.extract_strided_slice %62 {offsets = [32, 0], sizes = [32, 128], strides = [1, 1]} : vector<64x128xf32> to vector<32x128xf32>
    %68 = arith.addf %7, %67 : vector<32x128xf32>
    %c2_i32_21 = arith.constant 2 : i32
    %69 = tpu.dynamic_rotate %66 by %c2_i32_21 dim 1 : vector<32x128xf32>, i32 -> vector<32x128xf32>
    %70 = vector.broadcast %16 : vector<1x128xf32> to vector<32x128xf32>
    %71 = arith.mulf %69, %70 : vector<32x128xf32>
    %c126_i32_22 = arith.constant 126 : i32
    %72 = tpu.dynamic_rotate %66 by %c126_i32_22 dim 1 : vector<32x128xf32>, i32 -> vector<32x128xf32>
    %73 = vector.broadcast %28 : vector<1x128xf32> to vector<32x128xf32>
    %74 = arith.mulf %72, %73 : vector<32x128xf32>
    %75 = tpu.concatenate %71, %66, %74 in 0 : vector<32x128xf32>, vector<32x128xf32>, vector<32x128xf32> -> vector<96x128xf32>
    %76 = arith.truncf %75 : vector<96x128xf32> to vector<96x128xbf16>
    %c1 = arith.constant 1 : index
    %c0_23 = arith.constant 0 : index
    %c0_24 = arith.constant 0 : index
    %77 = vector.load %arg4[%c1, %c0_23, %c0_24] : memref<3x64x96xbf16, #tpu.memory_space<vmem>>, vector<1x64x96xbf16>
    %78 = vector.shape_cast %77 : vector<1x64x96xbf16> to vector<64x96xbf16>
    %cst_25 = arith.constant dense<0.000000e+00> : vector<64x128xf32>
    %79 = tpu.matmul %78, %76, %cst_25 {dimension_numbers = #tpu.dot_dimension_numbers<[1], [0], [0], [1], [0, 0, 1, 1], [], []>} : vector<64x96xbf16>, vector<96x128xbf16>, vector<64x128xf32> -> vector<64x128xf32>
    %80 = vector.extract_strided_slice %5 {offsets = [0, 1], sizes = [64, 1], strides = [1, 1]} : vector<64x3xf32> to vector<64x1xf32>
    %81 = vector.broadcast %80 : vector<64x1xf32> to vector<64x128xf32>
    %82 = arith.addf %79, %81 : vector<64x128xf32>
    %83 = vector.extract_strided_slice %82 {offsets = [0, 0], sizes = [32, 128], strides = [1, 1]} : vector<64x128xf32> to vector<32x128xf32>
    %84 = math.tanh %83 : vector<32x128xf32>
    %85 = vector.extract_strided_slice %82 {offsets = [32, 0], sizes = [32, 128], strides = [1, 1]} : vector<64x128xf32> to vector<32x128xf32>
    %86 = arith.negf %85 : vector<32x128xf32>
    %87 = math.exp %86 : vector<32x128xf32>
    %cst_26 = arith.constant 1.000000e+00 : f32
    %88 = vector.broadcast %cst_26 : f32 to vector<32x128xf32>
    %89 = arith.addf %88, %87 : vector<32x128xf32>
    %90 = arith.divf %88, %89 : vector<32x128xf32>
    %91 = arith.mulf %84, %90 : vector<32x128xf32>
    %c1_27 = arith.constant 1 : index
    %c0_28 = arith.constant 0 : index
    %c0_29 = arith.constant 0 : index
    %92 = vector.load %arg5[%c1_27, %c0_28, %c0_29] : memref<3x64x32xbf16, #tpu.memory_space<vmem>>, vector<1x64x32xbf16>
    %93 = vector.shape_cast %92 : vector<1x64x32xbf16> to vector<64x32xbf16>
    %94 = arith.truncf %91 : vector<32x128xf32> to vector<32x128xbf16>
    %cst_30 = arith.constant dense<0.000000e+00> : vector<64x128xf32>
    %95 = tpu.matmul %93, %94, %cst_30 {dimension_numbers = #tpu.dot_dimension_numbers<[1], [0], [0], [1], [0, 0, 1, 1], [], []>} : vector<64x32xbf16>, vector<32x128xbf16>, vector<64x128xf32> -> vector<64x128xf32>
    %96 = vector.extract_strided_slice %6 {offsets = [0, 1], sizes = [64, 1], strides = [1, 1]} : vector<64x3xf32> to vector<64x1xf32>
    %97 = vector.broadcast %96 : vector<64x1xf32> to vector<64x128xf32>
    %98 = arith.addf %95, %97 : vector<64x128xf32>
    %99 = vector.extract_strided_slice %98 {offsets = [0, 0], sizes = [32, 128], strides = [1, 1]} : vector<64x128xf32> to vector<32x128xf32>
    %100 = arith.addf %66, %99 : vector<32x128xf32>
    %101 = vector.broadcast %3 : vector<1x128xf32> to vector<32x128xf32>
    %102 = arith.mulf %100, %101 : vector<32x128xf32>
    %103 = vector.extract_strided_slice %98 {offsets = [32, 0], sizes = [32, 128], strides = [1, 1]} : vector<64x128xf32> to vector<32x128xf32>
    %104 = arith.addf %68, %103 : vector<32x128xf32>
    %c4_i32_31 = arith.constant 4 : i32
    %105 = tpu.dynamic_rotate %102 by %c4_i32_31 dim 1 : vector<32x128xf32>, i32 -> vector<32x128xf32>
    %106 = vector.broadcast %12 : vector<1x128xf32> to vector<32x128xf32>
    %107 = arith.mulf %105, %106 : vector<32x128xf32>
    %c124_i32_32 = arith.constant 124 : i32
    %108 = tpu.dynamic_rotate %102 by %c124_i32_32 dim 1 : vector<32x128xf32>, i32 -> vector<32x128xf32>
    %109 = vector.broadcast %32 : vector<1x128xf32> to vector<32x128xf32>
    %110 = arith.mulf %108, %109 : vector<32x128xf32>
    %111 = tpu.concatenate %107, %102, %110 in 0 : vector<32x128xf32>, vector<32x128xf32>, vector<32x128xf32> -> vector<96x128xf32>
    %112 = arith.truncf %111 : vector<96x128xf32> to vector<96x128xbf16>
    %c2 = arith.constant 2 : index
    %c0_33 = arith.constant 0 : index
    %c0_34 = arith.constant 0 : index
    %113 = vector.load %arg4[%c2, %c0_33, %c0_34] : memref<3x64x96xbf16, #tpu.memory_space<vmem>>, vector<1x64x96xbf16>
    %114 = vector.shape_cast %113 : vector<1x64x96xbf16> to vector<64x96xbf16>
    %cst_35 = arith.constant dense<0.000000e+00> : vector<64x128xf32>
    %115 = tpu.matmul %114, %112, %cst_35 {dimension_numbers = #tpu.dot_dimension_numbers<[1], [0], [0], [1], [0, 0, 1, 1], [], []>} : vector<64x96xbf16>, vector<96x128xbf16>, vector<64x128xf32> -> vector<64x128xf32>
    %116 = vector.extract_strided_slice %5 {offsets = [0, 2], sizes = [64, 1], strides = [1, 1]} : vector<64x3xf32> to vector<64x1xf32>
    %117 = vector.broadcast %116 : vector<64x1xf32> to vector<64x128xf32>
    %118 = arith.addf %115, %117 : vector<64x128xf32>
    %119 = vector.extract_strided_slice %118 {offsets = [0, 0], sizes = [32, 128], strides = [1, 1]} : vector<64x128xf32> to vector<32x128xf32>
    %120 = math.tanh %119 : vector<32x128xf32>
    %121 = vector.extract_strided_slice %118 {offsets = [32, 0], sizes = [32, 128], strides = [1, 1]} : vector<64x128xf32> to vector<32x128xf32>
    %122 = arith.negf %121 : vector<32x128xf32>
    %123 = math.exp %122 : vector<32x128xf32>
    %cst_36 = arith.constant 1.000000e+00 : f32
    %124 = vector.broadcast %cst_36 : f32 to vector<32x128xf32>
    %125 = arith.addf %124, %123 : vector<32x128xf32>
    %126 = arith.divf %124, %125 : vector<32x128xf32>
    %127 = arith.mulf %120, %126 : vector<32x128xf32>
    %c2_37 = arith.constant 2 : index
    %c0_38 = arith.constant 0 : index
    %c0_39 = arith.constant 0 : index
    %128 = vector.load %arg5[%c2_37, %c0_38, %c0_39] : memref<3x64x32xbf16, #tpu.memory_space<vmem>>, vector<1x64x32xbf16>
    %129 = vector.shape_cast %128 : vector<1x64x32xbf16> to vector<64x32xbf16>
    %130 = arith.truncf %127 : vector<32x128xf32> to vector<32x128xbf16>
    %cst_40 = arith.constant dense<0.000000e+00> : vector<64x128xf32>
    %131 = tpu.matmul %129, %130, %cst_40 {dimension_numbers = #tpu.dot_dimension_numbers<[1], [0], [0], [1], [0, 0, 1, 1], [], []>} : vector<64x32xbf16>, vector<32x128xbf16>, vector<64x128xf32> -> vector<64x128xf32>
    %132 = vector.extract_strided_slice %6 {offsets = [0, 2], sizes = [64, 1], strides = [1, 1]} : vector<64x3xf32> to vector<64x1xf32>
    %133 = vector.broadcast %132 : vector<64x1xf32> to vector<64x128xf32>
    %134 = arith.addf %131, %133 : vector<64x128xf32>
    %135 = vector.extract_strided_slice %134 {offsets = [32, 0], sizes = [32, 128], strides = [1, 1]} : vector<64x128xf32> to vector<32x128xf32>
    %136 = arith.addf %104, %135 : vector<32x128xf32>
    %137 = vector.broadcast %3 : vector<1x128xf32> to vector<32x128xf32>
    %138 = arith.mulf %136, %137 : vector<32x128xf32>
    %c0_41 = arith.constant 0 : index
    %c0_42 = arith.constant 0 : index
    %c0_43 = arith.constant 0 : index
    %139 = vector.load %arg7[%c0_41, %c0_42, %c0_43] : memref<1x32x128xf32, #tpu.memory_space<vmem>>, vector<1x32x128xf32>
    %140 = vector.shape_cast %139 : vector<1x32x128xf32> to vector<32x128xf32>
    %141 = vector.shape_cast %138 : vector<32x128xf32> to vector<1x32x128xf32>
    tpu.vector_store %arg7[%c0_41, %c0_42, %c0_43], %141 {strides = array<i32>} : memref<1x32x128xf32, #tpu.memory_space<vmem>>, vector<1x32x128xf32>,
    return
  }
  func.func @transform_0(%arg0: i32) -> (i32, i32, i32) {
    %c0_i32 = arith.constant 0 : i32
    %c0_i32_0 = arith.constant 0 : i32
    %c0_i32_1 = arith.constant 0 : i32
    return %arg0, %c0_i32, %c0_i32_0 : i32, i32, i32
  }
  func.func @transform_1(%arg0: i32) -> (i32, i32, i32) {
    %c0_i32 = arith.constant 0 : i32
    %c0_i32_0 = arith.constant 0 : i32
    %c0_i32_1 = arith.constant 0 : i32
    return %arg0, %c0_i32, %c0_i32_0 : i32, i32, i32
  }
  func.func @transform_2(%arg0: i32) -> (i32, i32, i32) {
    %c0_i32 = arith.constant 0 : i32
    %c0_i32_0 = arith.constant 0 : i32
    %c0_i32_1 = arith.constant 0 : i32
    return %arg0, %c0_i32, %c0_i32_0 : i32, i32, i32
  }
  func.func @transform_3(%arg0: i32) -> (i32, i32, i32) {
    %c0_i32 = arith.constant 0 : i32
    %c0_i32_0 = arith.constant 0 : i32
    %c0_i32_1 = arith.constant 0 : i32
    %c0_i32_2 = arith.constant 0 : i32
    return %c0_i32, %c0_i32_0, %c0_i32_1 : i32, i32, i32
  }
  func.func @transform_4(%arg0: i32) -> (i32, i32, i32) {
    %c0_i32 = arith.constant 0 : i32
    %c0_i32_0 = arith.constant 0 : i32
    %c0_i32_1 = arith.constant 0 : i32
    %c0_i32_2 = arith.constant 0 : i32
    return %c0_i32, %c0_i32_0, %c0_i32_1 : i32, i32, i32
  }
  func.func @transform_5(%arg0: i32) -> (i32, i32) {
    %c0_i32 = arith.constant 0 : i32
    %c0_i32_0 = arith.constant 0 : i32
    %c0_i32_1 = arith.constant 0 : i32
    return %c0_i32, %c0_i32_0 : i32, i32
  }
  func.func @transform_6(%arg0: i32) -> (i32, i32, i32) {
    %c0_i32 = arith.constant 0 : i32
    %c0_i32_0 = arith.constant 0 : i32
    %c0_i32_1 = arith.constant 0 : i32
    return %arg0, %c0_i32, %c0_i32_0 : i32, i32, i32
  }
}

</mosaic_0001>

<bundles_post_ra>
// kernel: tpu_custom_call.1
= control target key start
LH: loop header
LB: loop body
LE: loop exit
PB: predicated region body
PF: predicated region fallthrough
CT: control target
= control target key end

     0   :  { %11 = vsyncpa [#allocation3], 0  ;;  %s2360_s0 = inlined_call_operand.vmem [shape: f32[2,32,128], index: 0, kind: input, shape index: {}]   ;;  %s2361_s1 = inlined_call_operand.vmem [shape: f32[2,1,128], index: 1, kind: input, shape index: {}]   ;;  %s2362_s2 = inlined_call_operand.vmem [shape: f32[2,64,3], index: 2, kind: input, shape index: {}]   ;;  %s2363_s3 = inlined_call_operand.vmem [shape: bf16[3,64,96], index: 3, kind: input, shape index: {}]   ;;  %s2364_s4 = inlined_call_operand.vmem [shape: bf16[3,64,32], index: 4, kind: input, shape index: {}]   ;;  %s2365_s5 = inlined_call_operand.vmem [shape: f32[64,3], index: 5, kind: input, shape index: {}]   ;;  %s2366_s6 = inlined_call_operand.hbm [shape: f32[2,32,128], index: 6, kind: output, shape index: {}]  }
   0x1   :  { %13 = vsyncpa [#allocation3 + $0x1], 0  ;;  %s1900_s21 = smov 0   ;;  %s1902_s22 = smov 0  }
   0x2   :  { %s1904_s23 = smov 0   ;;  %s1906_s24 = smov 0  }
   0x3 LB: > { %s1921_s25 = sadd.s32 4294967295, %s1851_s24   ;;  %s1432_s26 = sadd.s32 4294967294, %s1851_s24   ;;  %s1851_s24 = sphi %s1906_s24, %s2378_s24   ;;  %s1847_s23 = sphi %s1904_s23, %s2377_s23   ;;  %s1843_s22 = sphi %s1902_s22, %s2376_s22   ;;  %s1839_s21 = sphi %s1900_s21, %s2375_s21  }
   0x4   : > { %s1925_s27 = sadd.s32 1, %s1851_s24   ;;  %s167_s28 = sadd.s32 1, %s1847_s23 }
   0x5   : > { %s164_s29 = ssub.s32 %s1851_s24, %s1925_s27  ;;  %p177_p0 = scmp.ne.s32.totalorder %s1847_s23, %s1843_s22 }
   0x6   : > { %p165_p1 = scmp.eq.s32.totalorder %s164_s29, 0  ;;  %p178_p2 = scmp.eq.s32.totalorder %s1921_s25, 1 }
   0x7   : > { %p183_p3 = scmp.ne.s32.totalorder %s1843_s22, %s1839_s21  ;;  %p184_p4 = scmp.eq.s32.totalorder %s1432_s26, 1 }
   0x8   : > { %s1936_s30 = scalar_select %p165_p1, %s1847_s23, %s167_s28  }
   0x9   : > { %p1938_p5 = por %p178_p2, %p177_p0  ;;  %p1942_p6 = por %p184_p4, %p183_p3 }
   0xa   : > { %p1435_p7 = scmp.ge.s32.totalorder %s1851_s24, 1  ;;  %p233_p8 = scmp.lt.s32.totalorder %s1851_s24, 3 }
   0xc   : > { %p234_p9 = pnand %p1435_p7, %p233_p8 }
   0xd   : > { %p271_p10 = scmp.lt.s32.totalorder (!%p234_p9), %s1921_s25, 1  ;;  %s1853_s17 = smov (!%p234_p9), 127  }
   0xe   : > { %237 = sbr.rel (%p234_p9) target bundleno = 1633 (0x661), region = 44  ;;  %s1854_s18 = smov (!%p234_p9), 1  }
   0xf   : > { %s268_s20 = sand.u32 (!%p234_p9), 1, %s1843_s22  }
  0x10   : > { %s1436_s26 = sshll.u32 (!%p234_p9), %s268_s20, 5 }
  0x11   : > { %s2315_s29 = scalar_lea.vmem (!%p234_p9), [#allocation2], %s1436_s26 }
  0x12   : > { %s1346_s14 = sshll.u32 (!%p234_p9), %s2315_s29, 4  ;;  %s1347_s14 = int_to_ptr.vmem [resolvable:$true] %s1346_s14 }
  0x13   : > { %s1950_s9 = scalar_select %p271_p10, %s1921_s25, 1  ;;  %v306_v4 = vlaneseq  ;;  %v1855_v10 = vmov 0   ;;  %v1856_v11 = vmov 0.0   ;;  %v1618_v37 = vld [vmem:[%s2363_s3] sm:$0xff]  ;;  %vm424_vm2 = vcmask 785408   ;;  %v1619_v39 = vld [vmem:[%s2363_s3 + $0x8] sm:$0xff] }
  0x14   : > { %1700 = vset.pattern.permute.xlu1 %v1855_v10  ;;  %1699 = vset.pattern.permute.xlu0 %v1855_v10  ;;  %v2033_v41 = vld [vmem:[%s2365_s5 + $0x18] sm:$0xff]  ;;  %v2040_v42 = vld [vmem:[%s2365_s5] sm:$0xff]  ;;  %v1620_v44 = vld [vmem:[%s2363_s3 + $0x10] sm:$0xff] }
  0x15   : > { %s1616_s10 = sshll.u32 %s1950_s9, 5  ;;  %s278_s13 = scalar_lea.vmem %s2361_s1, %s1950_s9  ;;  %v1977_v5 = vand.u32 127, %v306_v4  ;;  %1698 = vset.pattern.permute.xlu2 %v1855_v10  ;;  %v2053_v45 = vld [vmem:[%s2365_s5 + $0x10] sm:$0xff]  ;;  %v2060_v46 = vld [vmem:[%s2365_s5 + $0x8] sm:$0xff]  ;;  %v1621_v47 = vld [vmem:[%s2363_s3 + $0x18] sm:$0xff] }
  0x16   : > { %s275_s16 = scalar_lea.vmem %s2360_s0, %s1616_s10  ;;  %s1617_s19 = sshll.u32 %s1950_s9, 6 }
  0x17   : > { %v1960_v0 = vld [vmem:[%s275_s16 + $0x10] sm:$0xff]  ;;  %v1962_v1 = vld [vmem:[%s275_s16] sm:$0xff]  ;;  %v1967_v2 = vld [vmem:[%s275_s16 + $0x18] sm:$0xff]  ;;  %s1982_s28 = scalar_lea.vmem %s2362_s2, %s1617_s19  ;;  %vm317_vm0 = vcmp.lt.s32.totalorder %v1977_v5, 127  ;;  %vm314_vm1 = vcmp.ge.s32.totalorder %v1977_v5, 1  ;;  %s1857_s19 = smov 126  }
  0x18   : > { %342 = vrot.lane.b32.xlu0 %v1960_v0, %s1853_s17  ;;  %338 = vrot.lane.b32.xlu1 %v1962_v1, %s1853_s17  ;;  %v1969_v3 = vld [vmem:[%s275_s16 + $0x8] sm:$0xff]  ;;  %v1986_v8 = vld [vmem:[%s1982_s28 + $0x38] sm:$0xff]  ;;  %v1444_v12 = vsel %vm317_vm0, 1.0, %v1856_v11  ;;  %v353_v24 = vpack.c.bf16 %v1967_v2, %v1960_v0  ;;  %v1443_v25 = vsel %vm314_vm1, 1.0, %v1856_v11  ;;  %s1858_s9 = smov 2   ;;  %s1642_s10 = sshll.u32 %s1921_s25, 5 }
  0x19   : > { %330 = vrot.lane.b32.xlu2 %v1960_v0, %s1854_s18  ;;  %v1989_v9 = vld [vmem:[%s1982_s28 + $0x20] sm:$0xff]  ;;  %v2001_v21 = vld [vmem:[%s1982_s28 + $0x10] sm:$0xff]  ;;  %v2010_v27 = vld [vmem:[%s1982_s28 + $0x8] sm:$0xff]  ;;  %v352_v28 = vpack.c.bf16 %v1969_v3, %v1962_v1  ;;  %s1345_s12 = scalar_lea.hbm %s2366_s6, %s1642_s10  ;;  %s1334_s25 = scalar_lea.sflag [#allocation3], %s268_s20 }
  0x1a   : > { %v1998_v20 = vld [vmem:[%s1982_s28] sm:$0xff]  ;;  %v2020_v38 = vld [vmem:[%s1982_s28 + $0x30] sm:$0xff]  ;;  %v2028_v40 = vld [vmem:[%s1982_s28 + $0x28] sm:$0xff]  ;;  %s1348_s15 = sshll.u32 %s1345_s12, 4  ;;  %s1349_s15 = int_to_ptr.hbm [resolvable:$true] %s1348_s15 }
  0x1b   : > { %v2044_v43 = vld [vmem:[%s1982_s28 + $0x18] sm:$0xff]  ;;  %s1803_s16 = sshra.s32 %s1349_s15, 4  ;;  %s1804_s16 = int_to_ptr.hbm [resolvable:$true] %s1803_s16 }
  0x1c   : > { %p1810_p0 = scmp.lt.s32.totalorder %s1804_s16, %s2366_s6 }
  0x20   : > { %344 = vrot.lane.b32.xlu0 %v1967_v2, %s1853_s17  ;;  %340 = vrot.lane.b32.xlu1 %v1969_v3, %s1853_s17  ;;  %s1805_s17 = scalar_lea.hbm %s1804_s16, 32 }
  0x21   : > { %332 = vrot.lane.b32.xlu2 %v1967_v2, %s1854_s18  ;;  %p1806_p11 = scmp.ne.s32.totalorder %s1804_s16, %s1805_s17 }
  0x23   : > { %p1807_p12 = pnand %p1806_p11, %p1938_p5 }
  0x25   : > { %p1808_p13 = pneg %p1807_p12 }
  0x28   : > { %326 = vrot.lane.b32.xlu0 %v1962_v1, %s1854_s18  ;;  %328 = vrot.lane.b32.xlu1 %v1969_v3, %s1854_s18  ;;  %s1860_s18 = smov 124  }
  0x29   : > { %396 = vperm.xlu2 %1698, %v2020_v38  }
  0x30   : > { %401 = vperm.xlu0 %1699, %v1986_v8   ;;  %386 = vperm.xlu1 %1700, %v1989_v9  }
  0x31   : > { %391 = vperm.xlu2 %1698, %v2028_v40  }
  0x38   : > { %366 = vperm.xlu0 %1699, %v1998_v20   ;;  %376 = vperm.xlu1 %1700, %v2001_v21  }
  0x39   : > { %381 = vperm.xlu2 %1698, %v2044_v43  }
  0x40   : > { %371 = vperm.xlu1 %1700, %v2010_v27   ;;  %577 = vperm.xlu0 %1699, %v2033_v41  }
  0x41   : > { %572 = vperm.xlu2 %1698, %v2053_v45  }
  0x48   : > { %562 = vperm.xlu1 %1700, %v2040_v42  }
  0x49   : > { %567 = vperm.xlu2 %1698, %v2060_v46  }
  0x73   : > { %v331_v17 = vpop.permute.xlu2 %330 }
  0x74   : > { %v336_v31 = vmul.f32 %v1443_v25, %v331_v17 }
  0x7b   : > { %v333_v26 = vpop.permute.xlu2 %332 }
  0x7c   : > { %v337_v32 = vmul.f32 %v1443_v25, %v333_v26 }
  0x7e   : > { %v351_v35 = vpack.c.bf16 %v337_v32, %v336_v31 }
  0x83   : > { %v397_v52 = vpop.permute.xlu2 %396 }
  0x8a   : > { %v343_v6 = vpop.permute.xlu0 %342  ;;  %v339_v7 = vpop.permute.xlu1 %338 }
  0x8b   : > { %v348_v15 = vmul.f32 %v1444_v12, %v343_v6  ;;  %v346_v22 = vmul.f32 %v1444_v12, %v339_v7  ;;  %v392_v57 = vpop.permute.xlu2 %391 }
  0x92   : > { %v345_v13 = vpop.permute.xlu0 %344  ;;  %v341_v14 = vpop.permute.xlu1 %340 }
  0x93   : > { %v349_v16 = vmul.f32 %v1444_v12, %v345_v13  ;;  %v347_v18 = vmul.f32 %v1444_v12, %v341_v14 }
  0x95   : > { %v355_v19 = vpack.c.bf16 %v349_v16, %v348_v15  ;;  %v354_v23 = vpack.c.bf16 %v347_v18, %v346_v22 }
  0x97   : > { %439 = vmatpush.bf16.msra.mxu0 %v355_v19 }
  0x9a   : > { %v327_v29 = vpop.permute.xlu0 %326  ;;  %v329_v30 = vpop.permute.xlu1 %328 }
  0x9b   : > { %440 = vmatpush.bf16.msra.mxu0 %v354_v23  ;;  %v334_v33 = vmul.f32 %v1443_v25, %v327_v29  ;;  %v335_v34 = vmul.f32 %v1443_v25, %v329_v30 }
  0x9d   : > { %v350_v36 = vpack.c.bf16 %v335_v34, %v334_v33 }
  0x9f   : > { %441 = vmatpush.bf16.msra.mxu0 %v353_v24 }
  0xa2   : > { %v387_v53 = vpop.permute.xlu1 %386  ;;  %v402_v63 = vpop.permute.xlu0 %401 }
  0xa3   : > { %442 = vmatpush.bf16.msra.mxu0 %v352_v28 }
  0xa7   : > { %443 = vmatpush.bf16.msra.mxu0 %v351_v35 }
  0xaa   : > { %v377_v4 = vpop.permute.xlu1 %376  ;;  %v367_v19 = vpop.permute.xlu0 %366 }
  0xab   : > { %444 = vmatpush.bf16.msra.mxu0 %v350_v36 }
  0xae   : > { %1463 = vmatmul.msk.bf16.vlgmr.msra.gmra.mxu0 %vm424_vm2, %v1618_v37 }
  0xb2   : > { %v372_v23 = vpop.permute.xlu1 %371 }
  0xbe   : > { %1464 = vmatmul.msk.bf16.gmra.mxu0 %vm424_vm2, %v1619_v39 }
  0xce   : > { %1465 = vmatmul.msk.bf16.gmra.mxu0 %vm424_vm2, %v1620_v44 }
  0xde   : > { %1466 = vmatmul.msk.bf16.gmra.mxu0 %vm424_vm2, %v1621_v47 }
 0x12b   : > { %v446_v48 = vpop.f32.mrf.mxu0 }
 0x12c   : > { %v447_v29 = vadd.f32 %v446_v48, %v367_v19 }
 0x133   : > { %v448_v49 = vpop.f32.mrf.mxu0 }
 0x134   : > { %v449_v31 = vadd.f32 %v448_v49, %v372_v23 }
 0x13b   : > { %v2067_v50 = vpop.f32.mrf.mxu0 }
 0x143   : > { %v2069_v51 = vpop.f32.mrf.mxu0 }
 0x14b   : > { %v456_v54 = vpop.f32.mrf.mxu0 }
 0x14c   : > { %v457_v55 = vadd.f32 %v456_v54, %v387_v53 }
 0x14e   : > { %v1467_v56 = vmul.f32 -1.442695, %v457_v55 }
 0x150   : > { %1717 = vpow2.f32 %v1467_v56 }
 0x153   : > { %v458_v58 = vpop.f32.mrf.mxu0 }
 0x154   : > { %v459_v59 = vadd.f32 %v458_v58, %v392_v57 }
 0x156   : > { %v1718_v60 = vpop.eup %1717  ;;  %v1468_v61 = vmul.f32 -1.442695, %v459_v59 }
 0x157   : > { %v482_v62 = vadd.f32 1.0, %v1718_v60 }
 0x158   : > { %1719 = vpow2.f32 %v1468_v61 }
 0x159   : > { %1721 = vrcp.f32 %v482_v62  ;;  %v497_v34 = vand.u32 2147483648, %v482_v62  ;;  %vm491_vm4 = vweird.f32 %v482_v62  ;;  %v495_v36 = vand.u32 2147483647, %v482_v62 }
 0x15b   : > { %v461_v6 = vpop.f32.mrf.mxu0  ;;  %vm496_vm8 = vcmp.eq.f32.partialorder %v495_v36, 8.507059e+37 }
 0x15c   : > { %v462_v7 = vadd.f32 %v461_v6, %v397_v52  ;;  %v498_v52 = vor.u32 1.1754944e-38, %v497_v34 }
 0x15e   : > { %v1720_v12 = vpop.eup %1719  ;;  %v1469_v13 = vmul.f32 -1.442695, %v462_v7 }
 0x15f   : > { %v1722_v14 = vpop.eup %1721  ;;  %v483_v15 = vadd.f32 1.0, %v1720_v12  ;;  %v382_v12 = vpop.permute.xlu2 %381 }
 0x160   : > { %1723 = vpow2.f32 %v1469_v13  ;;  %v487_v16 = vmul.f32 %v1722_v14, %v482_v62  ;;  %vm492_vm3 = vweird.f32 %v1722_v14 }
 0x161   : > { %1725 = vrcp.f32 %v483_v15  ;;  %vm2071_vm5 = vmor %vm491_vm4, %vm492_vm3  ;;  %v512_v44 = vand.u32 2147483648, %v483_v15  ;;  %v510_v48 = vand.u32 2147483647, %v483_v15  ;;  %vm506_vm7 = vweird.f32 %v483_v15 }
 0x162   : > { %v488_v17 = vsub.f32 1.0, %v487_v16  ;;  %vm620_vm4 = vcmask 261120  }
 0x163   : > { %v463_v18 = vpop.f32.mrf.mxu0  ;;  %v513_v59 = vor.u32 1.1754944e-38, %v512_v44  ;;  %vm511_vm10 = vcmp.eq.f32.partialorder %v510_v48, 8.507059e+37  ;;  %v1623_v44 = vld [vmem:[%s2364_s4 + $0x8] sm:$0xff] }
 0x164   : > { %v464_v22 = vadd.f32 %v463_v18, %v402_v63  ;;  %v489_v24 = vmul.f32 %v1722_v14, %v488_v17  ;;  %v454_v17 = vadd.f32 %v2069_v51, %v382_v12 }
 0x166   : > { %v1724_v25 = vpop.eup %1723  ;;  %v1470_v26 = vmul.f32 -1.442695, %v464_v22  ;;  %v490_v33 = vadd.f32 %v1722_v14, %v489_v24 }
 0x167   : > { %v1726_v28 = vpop.eup %1725  ;;  %v484_v30 = vadd.f32 1.0, %v1724_v25 }
 0x168   : > { %1727 = vpow2.f32 %v1470_v26  ;;  %v502_v32 = vmul.f32 %v1726_v28, %v483_v15  ;;  %vm507_vm6 = vweird.f32 %v1726_v28  ;;  %v494_v47 = vsel %vm2071_vm5, %v1722_v14, %v490_v33 }
 0x169   : > { %1729 = vrcp.f32 %v484_v30  ;;  %vm508_vm9 = vmor %vm506_vm7, %vm507_vm6  ;;  %v499_v57 = vsel %vm496_vm8, %v498_v52, %v494_v47  ;;  %v452_v15 = vadd.f32 %v2067_v50, %v377_v4  ;;  %v527_v22 = vand.u32 2147483648, %v484_v30  ;;  %v563_v47 = vpop.permute.xlu1 %562 }
 0x16a   : > { %v503_v35 = vsub.f32 1.0, %v502_v32  ;;  %1731 = vtanh.f32 %v447_v29  ;;  %vm521_vm12 = vweird.f32 %v484_v30  ;;  %v525_v23 = vand.u32 2147483647, %v484_v30 }
 0x16b   : > { %1733 = vtanh.f32 %v449_v31  ;;  %v528_v31 = vor.u32 1.1754944e-38, %v527_v22  ;;  %vm320_vm5 = vcmp.lt.s32.totalorder %v1977_v5, 126  ;;  %vm311_vm6 = vcmp.ge.s32.totalorder %v1977_v5, 2 }
 0x16c   : > { %v504_v39 = vmul.f32 %v1726_v28, %v503_v35  ;;  %vm526_vm15 = vcmp.eq.f32.partialorder %v525_v23, 8.507059e+37 }
 0x16e   : > { %v1728_v49 = vpop.eup %1727  ;;  %v505_v53 = vadd.f32 %v1726_v28, %v504_v39  ;;  %v1622_v39 = vld [vmem:[%s2364_s4] sm:$0xff] }
 0x16f   : > { %v1730_v54 = vpop.eup %1729  ;;  %v485_v55 = vadd.f32 1.0, %v1728_v49  ;;  %v2092_v49 = vld [vmem:[%s278_s13] ss:$0 sm:$0xff] }
 0x170   : > { %v517_v56 = vmul.f32 %v1730_v54, %v484_v30  ;;  %v509_v58 = vsel %vm508_vm9, %v1726_v28, %v505_v53  ;;  %v1732_v60 = vpop.eup %1731  ;;  %vm522_vm11 = vweird.f32 %v1730_v54 }
 0x171   : > { %1735 = vrcp.f32 %v485_v55  ;;  %v1734_v61 = vpop.eup %1733  ;;  %v514_v63 = vsel %vm511_vm10, %v513_v59, %v509_v58  ;;  %v546_v6 = vmul.f32 %v1732_v60, %v499_v57  ;;  %vm523_vm13 = vmor %vm521_vm12, %vm522_vm11  ;;  %v542_v25 = vand.u32 2147483648, %v485_v55 }
 0x172   : > { %v518_v62 = vsub.f32 1.0, %v517_v56  ;;  %v547_v7 = vmul.f32 %v1734_v61, %v514_v63  ;;  %1737 = vtanh.f32 %v452_v15  ;;  %v540_v29 = vand.u32 2147483647, %v485_v55  ;;  %v573_v56 = vpop.permute.xlu2 %572 }
 0x173   : > { %1739 = vtanh.f32 %v454_v17  ;;  %vm536_vm0 = vweird.f32 %v485_v55  ;;  %v543_v4 = vor.u32 1.1754944e-38, %v542_v25 }
 0x174   : > { %v519_v13 = vmul.f32 %v1730_v54, %v518_v62  ;;  %v558_v14 = vpack.c.bf16 %v547_v7, %v546_v6  ;;  %vm541_vm3 = vcmp.eq.f32.partialorder %v540_v29, 8.507059e+37  ;;  %v1442_v29 = vsel %vm311_vm6, 1.0, %v1856_v11 }
 0x176   : > { %v520_v18 = vadd.f32 %v1730_v54, %v519_v13 }
 0x177   : > { %v1736_v16 = vpop.eup %1735 }
 0x178   : > { %v532_v19 = vmul.f32 %v1736_v16, %v485_v55  ;;  %v524_v26 = vsel %vm523_vm13, %v1730_v54, %v520_v18  ;;  %vm537_vm14 = vweird.f32 %v1736_v16  ;;  %v1738_v32 = vpop.eup %1737 }
 0x179   : > { %v529_v51 = vsel %vm526_vm15, %v528_v31, %v524_v26  ;;  %vm538_vm1 = vmor %vm536_vm0, %vm537_vm14  ;;  %v1740_v34 = vpop.eup %1739 }
 0x17a   : > { %v533_v24 = vsub.f32 1.0, %v532_v19  ;;  %v548_v35 = vmul.f32 %v1738_v32, %v529_v51  ;;  %v568_v60 = vpop.permute.xlu2 %567 }
 0x17c   : > { %v534_v28 = vmul.f32 %v1736_v16, %v533_v24 }
 0x17e   : > { %v535_v50 = vadd.f32 %v1736_v16, %v534_v28 }
 0x180   : > { %v539_v33 = vsel %vm538_vm1, %v1736_v16, %v535_v50 }
 0x181   : > { %v544_v30 = vsel %vm541_vm3, %v543_v4, %v539_v33 }
 0x182   : > { %v549_v36 = vmul.f32 %v1740_v34, %v544_v30 }
 0x184   : > { %v559_v37 = vpack.c.bf16 %v549_v36, %v548_v35 }
 0x186   : > { %639 = vmatpush.bf16.msrb.mxu0 %v559_v37  ;;  %1643 = vmatpush.bf16.msra.mxu1 %v559_v37  ;;  %v1627_v37 = vld [vmem:[%s2363_s3 + $0x28] sm:$0xff] }
 0x18a   : > { %640 = vmatpush.bf16.msrb.mxu0 %v558_v14  ;;  %1644 = vmatpush.bf16.msra.mxu1 %v558_v14 }
 0x18d   : > { %1487 = vmatmul.msk.bf16.vlgmr.msrb.gmra.mxu0 %vm620_vm4, %v1622_v39 }
 0x19d   : > { %1488 = vmatmul.msk.bf16.gmra.mxu0 %vm620_vm4, %v1623_v44 }
 0x20a   : > { %v642_v48 = vpop.f32.mrf.mxu0 }
 0x20b   : > { %v643_v52 = vadd.f32 %v642_v48, %v563_v47 }
 0x20d   : > { %v662_v53 = vadd.f32 %v643_v52, %v1962_v1  ;;  %v578_v1 = vpop.permute.xlu0 %577 }
 0x20f   : > { %v2096_v54 = vmul.f32 %v2092_v49, %v662_v53 }
 0x211   : > { %689 = vrot.lane.b32.xlu2 %v2096_v54, %s1857_s19 }
 0x212   : > { %v644_v55 = vpop.f32.mrf.mxu0 }
 0x213   : > { %v645_v61 = vadd.f32 %v644_v55, %v568_v60 }
 0x215   : > { %v663_v6 = vadd.f32 %v645_v61, %v1969_v3  ;;  %v1445_v3 = vsel %vm320_vm5, 1.0, %v1856_v11 }
 0x217   : > { %v2107_v13 = vmul.f32 %v2092_v49, %v663_v6 }
 0x219   : > { %v703_v51 = vpack.c.bf16 %v2107_v13, %v2096_v54 }
 0x21a   : > { %v647_v57 = vpop.f32.mrf.mxu0 }
 0x21b   : > { %v648_v58 = vadd.f32 %v647_v57, %v573_v56 }
 0x21d   : > { %v664_v59 = vadd.f32 %v648_v58, %v1960_v0 }
 0x21f   : > { %v2101_v62 = vmul.f32 %v2092_v49, %v664_v59 }
 0x221   : > { %693 = vrot.lane.b32.xlu0 %v2101_v62, %s1857_s19 }
 0x222   : > { %v649_v63 = vpop.f32.mrf.mxu0 }
 0x223   : > { %v650_v7 = vadd.f32 %v649_v63, %v578_v1 }
 0x225   : > { %v665_v12 = vadd.f32 %v650_v7, %v1967_v2  ;;  %v1859_v2 = vmov 1  }
 0x226   : > { %1703 = vset.pattern.permute.xlu1 %v1859_v2  ;;  %1702 = vset.pattern.permute.xlu0 %v1859_v2 }
 0x227   : > { %v2110_v14 = vmul.f32 %v2092_v49, %v665_v12  ;;  %1701 = vset.pattern.permute.xlu2 %v1859_v2 }
 0x229   : > { %695 = vrot.lane.b32.xlu1 %v2110_v14, %s1857_s19  ;;  %691 = vrot.lane.b32.xlu0 %v2107_v13, %s1857_s19  ;;  %v704_v28 = vpack.c.bf16 %v2110_v14, %v2101_v62  ;;  %s1861_s19 = smov 4  }
 0x22a   : > { %683 = vrot.lane.b32.xlu2 %v2110_v14, %s1858_s9 }
 0x231   : > { %681 = vrot.lane.b32.xlu1 %v2101_v62, %s1858_s9  ;;  %677 = vrot.lane.b32.xlu0 %v2096_v54, %s1858_s9 }
 0x232   : > { %741 = vperm.xlu2 %1701, %v2020_v38  }
 0x239   : > { %679 = vrot.lane.b32.xlu1 %v2107_v13, %s1858_s9  ;;  %745 = vperm.xlu0 %1702, %v1986_v8   ;;  %s1809_s9 = scalar_lea.hbm %s2366_s6, 64 }
 0x23a   : > { %737 = vperm.xlu2 %1701, %v2028_v40   ;;  %p1811_p1 = scmp.lt.s32.totalorder %s1809_s9, %s1805_s17 }
 0x23c   : > { %p1812_p2 = por %p1811_p1, %p1810_p0 }
 0x23e   : > { %p1813_p3 = pnand %p1812_p2, %p1808_p13 }
 0x241   : > { %733 = vperm.xlu1 %1703, %v1989_v9   ;;  %717 = vperm.xlu0 %1702, %v1998_v20  }
 0x242   : > { %729 = vperm.xlu2 %1701, %v2044_v43  }
 0x249   : > { %725 = vperm.xlu1 %1703, %v2001_v21   ;;  %917 = vperm.xlu0 %1702, %v2033_v41   ;;  %v1626_v41 = vld [vmem:[%s2363_s3 + $0x20] sm:$0xff] }
 0x24a   : > { %913 = vperm.xlu2 %1701, %v2053_v45   ;;  %v1629_v45 = vld [vmem:[%s2363_s3 + $0x38] sm:$0xff] }
 0x251   : > { %721 = vperm.xlu1 %1703, %v2010_v27  }
 0x252   : > { %909 = vperm.xlu2 %1701, %v2060_v46  }
 0x259   : > { %905 = vperm.xlu1 %1703, %v2040_v42   ;;  %v1628_v42 = vld [vmem:[%s2363_s3 + $0x30] sm:$0xff] }
 0x26b   : > { %v690_v19 = vpop.permute.xlu2 %689 }
 0x26c   : > { %v697_v24 = vmul.f32 %v1445_v3, %v690_v19 }
 0x284   : > { %v684_v31 = vpop.permute.xlu2 %683 }
 0x285   : > { %v688_v32 = vmul.f32 %v1442_v29, %v684_v31 }
 0x28c   : > { %v742_v48 = vpop.permute.xlu2 %741 }
 0x293   : > { %v694_v0 = vpop.permute.xlu0 %693 }
 0x294   : > { %v699_v17 = vmul.f32 %v1445_v3, %v694_v0  ;;  %v738_v57 = vpop.permute.xlu2 %737 }
 0x29b   : > { %v696_v15 = vpop.permute.xlu1 %695  ;;  %v692_v16 = vpop.permute.xlu0 %691 }
 0x29c   : > { %v700_v18 = vmul.f32 %v1445_v3, %v696_v15  ;;  %v698_v22 = vmul.f32 %v1445_v3, %v692_v16 }
 0x29e   : > { %v706_v23 = vpack.c.bf16 %v700_v18, %v699_v17  ;;  %v705_v25 = vpack.c.bf16 %v698_v22, %v697_v24 }
 0x2a0   : > { %782 = vmatpush.bf16.msra.mxu2 %v706_v23 }
 0x2a3   : > { %v682_v26 = vpop.permute.xlu1 %681  ;;  %v678_v33 = vpop.permute.xlu0 %677 }
 0x2a4   : > { %783 = vmatpush.bf16.msra.mxu2 %v705_v25  ;;  %v687_v50 = vmul.f32 %v1442_v29, %v682_v26  ;;  %v685_v35 = vmul.f32 %v1442_v29, %v678_v33 }
 0x2a6   : > { %v702_v30 = vpack.c.bf16 %v688_v32, %v687_v50 }
 0x2a8   : > { %784 = vmatpush.bf16.msra.mxu2 %v704_v28 }
 0x2ab   : > { %v680_v4 = vpop.permute.xlu1 %679  ;;  %v746_v63 = vpop.permute.xlu0 %745 }
 0x2ac   : > { %785 = vmatpush.bf16.msra.mxu2 %v703_v51  ;;  %v686_v34 = vmul.f32 %v1442_v29, %v680_v4 }
 0x2ae   : > { %v701_v36 = vpack.c.bf16 %v686_v34, %v685_v35  ;;  %v1631_v35 = vld [vmem:[%s2364_s4 + $0x28] sm:$0xff] }
 0x2b0   : > { %786 = vmatpush.bf16.msra.mxu2 %v702_v30 }
 0x2b3   : > { %v734_v52 = vpop.permute.xlu1 %733  ;;  %v718_v22 = vpop.permute.xlu0 %717 }
 0x2b4   : > { %787 = vmatpush.bf16.msra.mxu2 %v701_v36 }
 0x2b7   : > { %1515 = vmatmul.msk.bf16.vlgmr.msra.gmra.mxu2 %vm424_vm2, %v1626_v41 }
 0x2bb   : > { %v726_v6 = vpop.permute.xlu1 %725 }
 0x2c3   : > { %v722_v24 = vpop.permute.xlu1 %721 }
 0x2c7   : > { %1516 = vmatmul.msk.bf16.gmra.mxu2 %vm424_vm2, %v1627_v37 }
 0x2d7   : > { %1517 = vmatmul.msk.bf16.gmra.mxu2 %vm424_vm2, %v1628_v42 }
 0x2e7   : > { %1518 = vmatmul.msk.bf16.gmra.mxu2 %vm424_vm2, %v1629_v45 }
 0x33a   : > { %v789_v39 = vpop.f32.mrf.mxu2 }
 0x33b   : > { %v790_v31 = vadd.f32 %v789_v39, %v718_v22 }
 0x342   : > { %v791_v46 = vpop.f32.mrf.mxu2 }
 0x343   : > { %v792_v51 = vadd.f32 %v791_v46, %v722_v24 }
 0x34a   : > { %v2157_v44 = vpop.f32.mrf.mxu2 }
 0x352   : > { %v2159_v47 = vpop.f32.mrf.mxu2 }
 0x35a   : > { %v799_v53 = vpop.f32.mrf.mxu2 }
 0x35b   : > { %v800_v55 = vadd.f32 %v799_v53, %v734_v52 }
 0x35d   : > { %v1519_v56 = vmul.f32 -1.442695, %v800_v55 }
 0x35f   : > { %1741 = vpow2.f32 %v1519_v56 }
 0x362   : > { %v801_v58 = vpop.f32.mrf.mxu2 }
 0x363   : > { %v802_v59 = vadd.f32 %v801_v58, %v738_v57 }
 0x365   : > { %v1742_v60 = vpop.eup %1741  ;;  %v1520_v61 = vmul.f32 -1.442695, %v802_v59 }
 0x366   : > { %v825_v1 = vadd.f32 1.0, %v1742_v60 }
 0x367   : > { %1743 = vpow2.f32 %v1520_v61 }
 0x368   : > { %1745 = vrcp.f32 %v825_v1  ;;  %v840_v33 = vand.u32 2147483648, %v825_v1  ;;  %vm834_vm8 = vweird.f32 %v825_v1  ;;  %v838_v30 = vand.u32 2147483647, %v825_v1 }
 0x36a   : > { %v804_v7 = vpop.f32.mrf.mxu2  ;;  %v841_v39 = vor.u32 1.1754944e-38, %v840_v33  ;;  %vm839_vm12 = vcmp.eq.f32.partialorder %v838_v30, 8.507059e+37  ;;  %v1630_v30 = vld [vmem:[%s2364_s4 + $0x20] sm:$0xff] }
 0x36b   : > { %v805_v12 = vadd.f32 %v804_v7, %v742_v48  ;;  %v730_v7 = vpop.permute.xlu2 %729 }
 0x36d   : > { %v1744_v0 = vpop.eup %1743  ;;  %v1521_v3 = vmul.f32 -1.442695, %v805_v12 }
 0x36e   : > { %v1746_v15 = vpop.eup %1745  ;;  %v826_v16 = vadd.f32 1.0, %v1744_v0 }
 0x36f   : > { %1747 = vpow2.f32 %v1521_v3  ;;  %v830_v17 = vmul.f32 %v1746_v15, %v825_v1  ;;  %vm835_vm7 = vweird.f32 %v1746_v15  ;;  %v795_v3 = vadd.f32 %v2157_v44, %v726_v6 }
 0x370   : > { %1749 = vrcp.f32 %v826_v16  ;;  %vm2161_vm9 = vmor %vm834_vm8, %vm835_vm7  ;;  %v855_v41 = vand.u32 2147483648, %v826_v16  ;;  %v853_v42 = vand.u32 2147483647, %v826_v16  ;;  %vm849_vm11 = vweird.f32 %v826_v16 }
 0x371   : > { %v831_v18 = vsub.f32 1.0, %v830_v17 }
 0x372   : > { %v806_v19 = vpop.f32.mrf.mxu2  ;;  %v856_v57 = vor.u32 1.1754944e-38, %v855_v41  ;;  %vm854_vm14 = vcmp.eq.f32.partialorder %v853_v42, 8.507059e+37  ;;  %v906_v41 = vpop.permute.xlu1 %905 }
 0x373   : > { %v807_v23 = vadd.f32 %v806_v19, %v746_v63  ;;  %v832_v25 = vmul.f32 %v1746_v15, %v831_v18 }
 0x375   : > { %v1748_v26 = vpop.eup %1747  ;;  %v1522_v28 = vmul.f32 -1.442695, %v807_v23  ;;  %v833_v32 = vadd.f32 %v1746_v15, %v832_v25 }
 0x376   : > { %v1750_v29 = vpop.eup %1749  ;;  %v827_v50 = vadd.f32 1.0, %v1748_v26 }
 0x377   : > { %1751 = vpow2.f32 %v1522_v28  ;;  %v845_v4 = vmul.f32 %v1750_v29, %v826_v16  ;;  %vm850_vm10 = vweird.f32 %v1750_v29  ;;  %v837_v37 = vsel %vm2161_vm9, %v1746_v15, %v833_v32 }
 0x378   : > { %1753 = vrcp.f32 %v827_v50  ;;  %vm851_vm13 = vmor %vm849_vm11, %vm850_vm10  ;;  %v842_v55 = vsel %vm839_vm12, %v841_v39, %v837_v37  ;;  %v797_v16 = vadd.f32 %v2159_v47, %v730_v7  ;;  %v870_v19 = vand.u32 2147483648, %v827_v50 }
 0x379   : > { %v846_v34 = vsub.f32 1.0, %v845_v4  ;;  %1755 = vtanh.f32 %v790_v31  ;;  %vm864_vm0 = vweird.f32 %v827_v50  ;;  %v868_v22 = vand.u32 2147483647, %v827_v50 }
 0x37a   : > { %1757 = vtanh.f32 %v792_v51  ;;  %vm323_vm9 = vcmp.lt.s32.totalorder %v1977_v5, 124  ;;  %vm308_vm10 = vcmp.ge.s32.totalorder %v1977_v5, 4 }
 0x37b   : > { %v847_v36 = vmul.f32 %v1750_v29, %v846_v34  ;;  %vm869_vm5 = vcmp.eq.f32.partialorder %v868_v22, 8.507059e+37 }
 0x37d   : > { %v1752_v45 = vpop.eup %1751  ;;  %v848_v46 = vadd.f32 %v1750_v29, %v847_v36  ;;  %v914_v36 = vpop.permute.xlu2 %913 }
 0x37e   : > { %v1754_v48 = vpop.eup %1753  ;;  %v828_v52 = vadd.f32 1.0, %v1752_v45 }
 0x37f   : > { %v860_v53 = vmul.f32 %v1754_v48, %v827_v50  ;;  %v852_v56 = vsel %vm851_vm13, %v1750_v29, %v848_v46  ;;  %v1756_v58 = vpop.eup %1755  ;;  %vm865_vm15 = vweird.f32 %v1754_v48  ;;  %v871_v29 = vor.u32 1.1754944e-38, %v870_v19 }
 0x380   : > { %1759 = vrcp.f32 %v828_v52  ;;  %v1758_v59 = vpop.eup %1757  ;;  %v857_v61 = vsel %vm854_vm14, %v856_v57, %v852_v56  ;;  %v889_v1 = vmul.f32 %v1756_v58, %v842_v55  ;;  %vm866_vm1 = vmor %vm864_vm0, %vm865_vm15  ;;  %v885_v24 = vand.u32 2147483648, %v828_v52  ;;  %v918_v55 = vpop.permute.xlu0 %917 }
 0x381   : > { %v861_v60 = vsub.f32 1.0, %v860_v53  ;;  %v890_v63 = vmul.f32 %v1758_v59, %v857_v61  ;;  %1761 = vtanh.f32 %v795_v3  ;;  %v883_v28 = vand.u32 2147483647, %v828_v52 }
 0x382   : > { %1763 = vtanh.f32 %v797_v16  ;;  %vm879_vm6 = vweird.f32 %v828_v52  ;;  %v886_v6 = vor.u32 1.1754944e-38, %v885_v24 }
 0x383   : > { %v862_v12 = vmul.f32 %v1754_v48, %v861_v60  ;;  %v902_v0 = vpack.c.bf16 %v890_v63, %v889_v1  ;;  %vm884_vm8 = vcmp.eq.f32.partialorder %v883_v28, 8.507059e+37 }
 0x385   : > { %v863_v17 = vadd.f32 %v1754_v48, %v862_v12  ;;  %v910_v56 = vpop.permute.xlu2 %909 }
 0x386   : > { %v1760_v15 = vpop.eup %1759 }
 0x387   : > { %v875_v18 = vmul.f32 %v1760_v15, %v828_v52  ;;  %v867_v25 = vsel %vm866_vm1, %v1754_v48, %v863_v17  ;;  %vm880_vm3 = vweird.f32 %v1760_v15  ;;  %v1762_v31 = vpop.eup %1761 }
 0x388   : > { %v872_v47 = vsel %vm869_vm5, %v871_v29, %v867_v25  ;;  %vm881_vm7 = vmor %vm879_vm6, %vm880_vm3  ;;  %v1764_v4 = vpop.eup %1763 }
 0x389   : > { %v876_v23 = vsub.f32 1.0, %v875_v18  ;;  %v891_v32 = vmul.f32 %v1762_v31, %v872_v47  ;;  %v1634_v31 = vld [vmem:[%s2363_s3 + $0x40] sm:$0xff] }
 0x38b   : > { %v877_v26 = vmul.f32 %v1760_v15, %v876_v23 }
 0x38d   : > { %v878_v44 = vadd.f32 %v1760_v15, %v877_v26 }
 0x38f   : > { %v882_v51 = vsel %vm881_vm7, %v1760_v15, %v878_v44 }
 0x390   : > { %v887_v50 = vsel %vm884_vm8, %v886_v6, %v882_v51  ;;  %v1636_v51 = vld [vmem:[%s2363_s3 + $0x50] sm:$0xff] }
 0x391   : > { %v892_v33 = vmul.f32 %v1764_v4, %v887_v50  ;;  %v1637_v4 = vld [vmem:[%s2363_s3 + $0x58] sm:$0xff] }
 0x393   : > { %v903_v34 = vpack.c.bf16 %v892_v33, %v891_v32 }
 0x395   : > { %974 = vmatpush.bf16.msrb.mxu2 %v903_v34  ;;  %1645 = vmatpush.bf16.msra.mxu3 %v903_v34 }
 0x399   : > { %975 = vmatpush.bf16.msrb.mxu2 %v902_v0  ;;  %1646 = vmatpush.bf16.msra.mxu3 %v902_v0 }
 0x39c   : > { %1547 = vmatmul.msk.bf16.vlgmr.msrb.gmra.mxu2 %vm620_vm4, %v1630_v30  ;;  %1548 = vmatmul.msk.bf16.vlgmr.msra.gmra.mxu3 %vm620_vm4, %v1631_v35 }
 0x41f   : > { %v977_v37 = vpop.f32.mrf.mxu2  ;;  %v982_v42 = vpop.f32.mrf.mxu3 }
 0x420   : > { %v978_v45 = vadd.f32 %v977_v37, %v906_v41  ;;  %v983_v39 = vadd.f32 %v982_v42, %v914_v36 }
 0x422   : > { %v997_v46 = vadd.f32 %v978_v45, %v2096_v54  ;;  %v999_v48 = vadd.f32 %v983_v39, %v2101_v62 }
 0x424   : > { %v2180_v52 = vmul.f32 %v2092_v49, %v999_v48  ;;  %v2183_v53 = vmul.f32 %v2092_v49, %v997_v46 }
 0x426   : > { %1025 = vrot.lane.b32.xlu0 %v2180_v52, %s1860_s18  ;;  %1021 = vrot.lane.b32.xlu2 %v2183_v53, %s1860_s18 }
 0x427   : > { %v979_v57 = vpop.f32.mrf.mxu2  ;;  %v984_v58 = vpop.f32.mrf.mxu3 }
 0x428   : > { %v980_v59 = vadd.f32 %v979_v57, %v910_v56  ;;  %v985_v60 = vadd.f32 %v984_v58, %v918_v55 }
 0x42a   : > { %v998_v54 = vadd.f32 %v980_v59, %v2107_v13  ;;  %v1000_v62 = vadd.f32 %v985_v60, %v2110_v14  ;;  %v1862_v13 = vmov 2   ;;  %v1632_v14 = vld [vmem:[%s2364_s4 + $0x30] sm:$0xff] }
 0x42b   : > { %1706 = vset.pattern.permute.xlu1 %v1862_v13  ;;  %1704 = vset.pattern.permute.xlu2 %v1862_v13 }
 0x42c   : > { %v2190_v61 = vmul.f32 %v2092_v49, %v1000_v62  ;;  %v2193_v1 = vmul.f32 %v2092_v49, %v998_v54  ;;  %1705 = vset.pattern.permute.xlu0 %v1862_v13  ;;  %1549 = vmatmul.msk.bf16.gmra.mxu3 %vm620_vm4, %v1632_v14 }
 0x42e   : > { %1027 = vrot.lane.b32.xlu1 %v2190_v61, %s1860_s18  ;;  %1023 = vrot.lane.b32.xlu0 %v2193_v1, %s1860_s18  ;;  %v1036_v63 = vpack.c.bf16 %v2190_v61, %v2180_v52  ;;  %v1035_v7 = vpack.c.bf16 %v2193_v1, %v2183_v53 }
 0x42f   : > { %1015 = vrot.lane.b32.xlu2 %v2190_v61, %s1861_s19 }
 0x436   : > { %1013 = vrot.lane.b32.xlu1 %v2180_v52, %s1861_s19  ;;  %1009 = vrot.lane.b32.xlu0 %v2183_v53, %s1861_s19 }
 0x437   : > { %1073 = vperm.xlu2 %1704, %v2020_v38   ;;  %v303_v38 = vld [vmem:[%s2365_s5 + $0x28] sm:$0xff] }
 0x43e   : > { %1011 = vrot.lane.b32.xlu1 %v2193_v1, %s1861_s19  ;;  %1077 = vperm.xlu0 %1705, %v1986_v8   ;;  %v1633_v8 = vld [vmem:[%s2364_s4 + $0x38] sm:$0xff] }
 0x43f   : > { %1069 = vperm.xlu2 %1704, %v2028_v40   ;;  %1550 = vmatmul.msk.bf16.gmra.mxu3 %vm620_vm4, %v1633_v8 }
 0x446   : > { %1065 = vperm.xlu1 %1706, %v1989_v9   ;;  %1049 = vperm.xlu0 %1705, %v1998_v20   ;;  %v1624_v9 = vld [vmem:[%s2364_s4 + $0x10] sm:$0xff] }
 0x447   : > { %1489 = vmatmul.msk.bf16.vlgmr.msra.gmra.mxu1 %vm620_vm4, %v1624_v9  ;;  %1061 = vperm.xlu2 %1704, %v2044_v43   ;;  %v304_v20 = vld [vmem:[%s2365_s5 + $0x30] sm:$0xff]  ;;  %v1446_v43 = vsel %vm323_vm9, 1.0, %v1856_v11 }
 0x44e   : > { %1057 = vperm.xlu1 %1706, %v2001_v21   ;;  %1708 = vset.pattern.permute.xlu0 %v1855_v10  ;;  %v1625_v21 = vld [vmem:[%s2364_s4 + $0x18] sm:$0xff] }
 0x44f   : > { %1707 = vset.pattern.permute.xlu2 %v1855_v10  ;;  %587 = vperm.xlu0 %1708, %v303_v38  }
 0x456   : > { %1053 = vperm.xlu1 %1706, %v2010_v27   ;;  %v302_v27 = vld [vmem:[%s2365_s5 + $0x20] sm:$0xff] }
 0x457   : > { %1490 = vmatmul.msk.bf16.gmra.mxu1 %vm620_vm4, %v1625_v21  ;;  %582 = vperm.xlu2 %1707, %v302_v27  }
 0x458   : > { %1712 = vset.pattern.permute.xlu0 %v1859_v2 }
 0x459   : > { %929 = vperm.xlu0 %1712, %v304_v20  }
 0x45e   : > { %1709 = vset.pattern.permute.xlu1 %v1855_v10  ;;  %v305_v10 = vld [vmem:[%s2365_s5 + $0x38] sm:$0xff] }
 0x45f   : > { %592 = vperm.xlu1 %1709, %v304_v20   ;;  %597 = vperm.xlu2 %1707, %v305_v10  }
 0x461   : > { %1715 = vset.pattern.permute.xlu0 %v1862_v13 }
 0x462   : > { %1261 = vperm.xlu0 %1715, %v305_v10  }
 0x467   : > { %1710 = vset.pattern.permute.xlu1 %v1859_v2  ;;  %1711 = vset.pattern.permute.xlu2 %v1859_v2  ;;  %v1441_v2 = vsel %vm308_vm10, 1.0, %v1856_v11  ;;  %v1635_v11 = vld [vmem:[%s2363_s3 + $0x48] sm:$0xff] }
 0x468   : > { %921 = vperm.xlu1 %1710, %v302_v27   ;;  %925 = vperm.xlu2 %1711, %v303_v38  }
 0x470   : > { %933 = vperm.xlu1 %1710, %v305_v10   ;;  %1713 = vset.pattern.permute.xlu2 %v1862_v13 }
 0x471   : > { %1249 = vperm.xlu2 %1713, %v302_v27  }
 0x478   : > { %1714 = vset.pattern.permute.xlu1 %v1862_v13 }
 0x479   : > { %1253 = vperm.xlu1 %1714, %v303_v38   ;;  %1257 = vperm.xlu2 %1713, %v304_v20  }
 0x480   : > { %v1022_v16 = vpop.permute.xlu2 %1021 }
 0x481   : > { %v1029_v19 = vmul.f32 %v1446_v43, %v1022_v16 }
 0x489   : > { %v1016_v24 = vpop.permute.xlu2 %1015 }
 0x48a   : > { %v1020_v28 = vmul.f32 %v1441_v2, %v1016_v24 }
 0x491   : > { %v1074_v37 = vpop.permute.xlu2 %1073 }
 0x498   : > { %v1026_v40 = vpop.permute.xlu0 %1025 }
 0x499   : > { %v1031_v3 = vmul.f32 %v1446_v43, %v1026_v40  ;;  %v1070_v48 = vpop.permute.xlu2 %1069 }
 0x4a0   : > { %v1028_v12 = vpop.permute.xlu1 %1027  ;;  %v1024_v0 = vpop.permute.xlu0 %1023 }
 0x4a1   : > { %v1032_v15 = vmul.f32 %v1446_v43, %v1028_v12  ;;  %v1030_v17 = vmul.f32 %v1446_v43, %v1024_v0 }
 0x4a3   : > { %v1038_v18 = vpack.c.bf16 %v1032_v15, %v1031_v3  ;;  %v1037_v22 = vpack.c.bf16 %v1030_v17, %v1029_v19 }
 0x4a5   : > { %1114 = vmatpush.bf16.msrb.mxu1 %v1038_v18 }
 0x4a8   : > { %v1014_v23 = vpop.permute.xlu1 %1013  ;;  %v1010_v29 = vpop.permute.xlu0 %1009 }
 0x4a9   : > { %1115 = vmatpush.bf16.msrb.mxu1 %v1037_v22  ;;  %v1019_v25 = vmul.f32 %v1441_v2, %v1014_v23  ;;  %v1017_v6 = vmul.f32 %v1441_v2, %v1010_v29 }
 0x4ab   : > { %v1034_v47 = vpack.c.bf16 %v1020_v28, %v1019_v25 }
 0x4ad   : > { %1116 = vmatpush.bf16.msrb.mxu1 %v1036_v63 }
 0x4b0   : > { %v1012_v26 = vpop.permute.xlu1 %1011  ;;  %v1078_v59 = vpop.permute.xlu0 %1077 }
 0x4b1   : > { %1117 = vmatpush.bf16.msrb.mxu1 %v1035_v7  ;;  %v1018_v44 = vmul.f32 %v1441_v2, %v1012_v26 }
 0x4b3   : > { %v1033_v5 = vpack.c.bf16 %v1018_v44, %v1017_v6 }
 0x4b5   : > { %1118 = vmatpush.bf16.msrb.mxu1 %v1034_v47 }
 0x4b8   : > { %v1066_v42 = vpop.permute.xlu1 %1065  ;;  %v1050_v21 = vpop.permute.xlu0 %1049 }
 0x4b9   : > { %1119 = vmatpush.bf16.msrb.mxu1 %v1033_v5 }
 0x4bc   : > { %1575 = vmatmul.msk.bf16.vlgmr.msrb.gmra.mxu1 %vm424_vm2, %v1634_v31 }
 0x4c0   : > { %v1058_v54 = vpop.permute.xlu1 %1057 }
 0x4c4   : > { %v2273_v50 = vpop.f32.mrf.mxu1 }
 0x4c8   : > { %v1054_v10 = vpop.permute.xlu1 %1053 }
 0x4cc   : > { %1576 = vmatmul.msk.bf16.gmra.mxu1 %vm424_vm2, %v1635_v11  ;;  %v2275_v32 = vpop.f32.mrf.mxu1 }
 0x4d4   : > { %v2277_v33 = vpop.f32.mrf.mxu1 }
 0x4dc   : > { %1577 = vmatmul.msk.bf16.gmra.mxu1 %vm424_vm2, %v1636_v51  ;;  %v2279_v34 = vpop.f32.mrf.mxu1 }
 0x4ec   : > { %1578 = vmatmul.msk.bf16.gmra.mxu1 %vm424_vm2, %v1637_v4 }
 0x539   : > { %v1121_v30 = vpop.f32.mrf.mxu1 }
 0x53a   : > { %v1122_v40 = vadd.f32 %v1121_v30, %v1050_v21  ;;  %v1639_v21 = vld [vmem:[%s2364_s4 + $0x48] sm:$0xff] }
 0x541   : > { %v1123_v35 = vpop.f32.mrf.mxu1 }
 0x542   : > { %v1124_v12 = vadd.f32 %v1123_v35, %v1054_v10  ;;  %v987_v10 = vpop.f32.mrf.mxu3 }
 0x549   : > { %v2281_v36 = vpop.f32.mrf.mxu1 }
 0x551   : > { %v2283_v41 = vpop.f32.mrf.mxu1 }
 0x559   : > { %v1131_v45 = vpop.f32.mrf.mxu1 }
 0x55a   : > { %v1132_v39 = vadd.f32 %v1131_v45, %v1066_v42  ;;  %v1062_v45 = vpop.permute.xlu2 %1061 }
 0x55c   : > { %v1579_v46 = vmul.f32 -1.442695, %v1132_v39  ;;  %v1127_v39 = vadd.f32 %v2281_v36, %v1058_v54 }
 0x55e   : > { %1765 = vpow2.f32 %v1579_v46 }
 0x561   : > { %v1133_v52 = vpop.f32.mrf.mxu1 }
 0x562   : > { %v1134_v53 = vadd.f32 %v1133_v52, %v1070_v48  ;;  %v1129_v48 = vadd.f32 %v2283_v41, %v1062_v45 }
 0x564   : > { %v1766_v55 = vpop.eup %1765  ;;  %v1580_v56 = vmul.f32 -1.442695, %v1134_v53 }
 0x565   : > { %v1157_v57 = vadd.f32 1.0, %v1766_v55 }
 0x566   : > { %1767 = vpow2.f32 %v1580_v56 }
 0x567   : > { %1769 = vrcp.f32 %v1157_v57  ;;  %v1172_v15 = vand.u32 2147483648, %v1157_v57  ;;  %vm1166_vm11 = vweird.f32 %v1157_v57  ;;  %v1170_v17 = vand.u32 2147483647, %v1157_v57 }
 0x569   : > { %v1136_v58 = vpop.f32.mrf.mxu1  ;;  %v1173_v25 = vor.u32 1.1754944e-38, %v1172_v15  ;;  %vm1171_vm15 = vcmp.eq.f32.partialorder %v1170_v17, 8.507059e+37 }
 0x56a   : > { %v1137_v60 = vadd.f32 %v1136_v58, %v1074_v37 }
 0x56c   : > { %v1768_v62 = vpop.eup %1767  ;;  %v1581_v61 = vmul.f32 -1.442695, %v1137_v60 }
 0x56d   : > { %v1770_v1 = vpop.eup %1769  ;;  %v1158_v63 = vadd.f32 1.0, %v1768_v62 }
 0x56e   : > { %1771 = vpow2.f32 %v1581_v61  ;;  %v1162_v7 = vmul.f32 %v1770_v1, %v1157_v57  ;;  %vm1167_vm2 = vweird.f32 %v1770_v1 }
 0x56f   : > { %1773 = vrcp.f32 %v1158_v63  ;;  %vm2285_vm12 = vmor %vm1166_vm11, %vm1167_vm2  ;;  %v1187_v22 = vand.u32 2147483648, %v1158_v63  ;;  %v1185_v2 = vand.u32 2147483647, %v1158_v63  ;;  %vm1181_vm14 = vweird.f32 %v1158_v63 }
 0x570   : > { %v1163_v13 = vsub.f32 1.0, %v1162_v7 }
 0x571   : > { %v1138_v14 = vpop.f32.mrf.mxu1  ;;  %v1188_v5 = vor.u32 1.1754944e-38, %v1187_v22  ;;  %vm1186_vm1 = vcmp.eq.f32.partialorder %v1185_v2, 8.507059e+37 }
 0x572   : > { %v1139_v9 = vadd.f32 %v1138_v14, %v1078_v59  ;;  %v1164_v8 = vmul.f32 %v1770_v1, %v1163_v13 }
 0x574   : > { %v1772_v20 = vpop.eup %1771  ;;  %v1582_v27 = vmul.f32 -1.442695, %v1139_v9  ;;  %v1165_v3 = vadd.f32 %v1770_v1, %v1164_v8 }
 0x575   : > { %v1774_v38 = vpop.eup %1773  ;;  %v1159_v43 = vadd.f32 1.0, %v1772_v20  ;;  %v1638_v20 = vld [vmem:[%s2364_s4 + $0x40] sm:$0xff] }
 0x576   : > { %1775 = vpow2.f32 %v1582_v27  ;;  %v1177_v0 = vmul.f32 %v1774_v38, %v1158_v63  ;;  %vm1182_vm13 = vweird.f32 %v1774_v38  ;;  %v1169_v23 = vsel %vm2285_vm12, %v1770_v1, %v1165_v3  ;;  %v1640_v27 = vld [vmem:[%s2364_s4 + $0x50] sm:$0xff]  ;;  %v583_v3 = vpop.permute.xlu2 %582 }
 0x577   : > { %1777 = vrcp.f32 %v1159_v43  ;;  %vm1183_vm0 = vmor %vm1181_vm14, %vm1182_vm13  ;;  %v1174_v47 = vsel %vm1171_vm15, %v1173_v25, %v1169_v23  ;;  %v1202_v55 = vand.u32 2147483648, %v1159_v43  ;;  %vm1196_vm5 = vweird.f32 %v1159_v43 }
 0x578   : > { %v1178_v16 = vsub.f32 1.0, %v1177_v0  ;;  %1779 = vtanh.f32 %v1122_v40  ;;  %v1200_v56 = vand.u32 2147483647, %v1159_v43  ;;  %v989_v40 = vpop.f32.mrf.mxu3  ;;  %v653_v2 = vadd.f32 %v2273_v50, %v583_v3 }
 0x579   : > { %1781 = vtanh.f32 %v1124_v12  ;;  %v1203_v61 = vor.u32 1.1754944e-38, %v1202_v55 }
 0x57a   : > { %v1179_v19 = vmul.f32 %v1774_v38, %v1178_v16  ;;  %vm1201_vm8 = vcmp.eq.f32.partialorder %v1200_v56, 8.507059e+37  ;;  %v593_v16 = vpop.permute.xlu1 %592 }
 0x57c   : > { %v1776_v24 = vpop.eup %1775  ;;  %v1180_v26 = vadd.f32 %v1774_v38, %v1179_v19 }
 0x57d   : > { %v1778_v28 = vpop.eup %1777  ;;  %v1160_v29 = vadd.f32 1.0, %v1776_v24 }
 0x57e   : > { %v1192_v44 = vmul.f32 %v1778_v28, %v1159_v43  ;;  %v1184_v6 = vsel %vm1183_vm0, %v1774_v38, %v1180_v26  ;;  %v1780_v31 = vpop.eup %1779  ;;  %vm1197_vm3 = vweird.f32 %v1778_v28  ;;  %v1641_v38 = vld [vmem:[%s2364_s4 + $0x58] sm:$0xff]  ;;  %v598_v17 = vpop.permute.xlu2 %597 }
 0x57f   : > { %1783 = vrcp.f32 %v1160_v29  ;;  %v1782_v11 = vpop.eup %1781  ;;  %v1189_v4 = vsel %vm1186_vm1, %v1188_v5, %v1184_v6  ;;  %v1221_v30 = vmul.f32 %v1780_v31, %v1174_v47  ;;  %vm1198_vm6 = vmor %vm1196_vm5, %vm1197_vm3  ;;  %v1217_v58 = vand.u32 2147483648, %v1160_v29  ;;  %v588_v47 = vpop.permute.xlu0 %587 }
 0x580   : > { %v1193_v51 = vsub.f32 1.0, %v1192_v44  ;;  %v1222_v35 = vmul.f32 %v1782_v11, %v1189_v4  ;;  %1785 = vtanh.f32 %v1127_v39  ;;  %v1215_v62 = vand.u32 2147483647, %v1160_v29  ;;  %v992_v43 = vpop.f32.mrf.mxu3 }
 0x581   : > { %1787 = vtanh.f32 %v1129_v48  ;;  %vm1211_vm9 = vweird.f32 %v1160_v29  ;;  %v1218_v54 = vor.u32 1.1754944e-38, %v1217_v58  ;;  %v655_v5 = vadd.f32 %v2275_v32, %v588_v47 }
 0x582   : > { %v1194_v37 = vmul.f32 %v1778_v28, %v1193_v51  ;;  %v1234_v42 = vpack.c.bf16 %v1222_v35, %v1221_v30  ;;  %vm1216_vm2 = vcmp.eq.f32.partialorder %v1215_v62, 8.507059e+37  ;;  %v922_v19 = vpop.permute.xlu1 %921  ;;  %v660_v55 = vadd.f32 %v2279_v34, %v598_v17 }
 0x583   : > { %v988_v24 = vadd.f32 %v987_v10, %v922_v19 }
 0x584   : > { %v1195_v52 = vadd.f32 %v1778_v28, %v1194_v37 }
 0x585   : > { %v1784_v46 = vpop.eup %1783 }
 0x586   : > { %v1207_v53 = vmul.f32 %v1784_v46, %v1160_v29  ;;  %v1199_v59 = vsel %vm1198_vm6, %v1778_v28, %v1195_v52  ;;  %vm1212_vm7 = vweird.f32 %v1784_v46  ;;  %v1786_v1 = vpop.eup %1785  ;;  %v926_v22 = vpop.permute.xlu2 %925  ;;  %v1005_v29 = vadd.f32 %v988_v24, %v653_v2 }
 0x587   : > { %v1204_v41 = vsel %vm1201_vm8, %v1203_v61, %v1199_v59  ;;  %vm1213_vm10 = vmor %vm1211_vm9, %vm1212_vm7  ;;  %v1788_v7 = vpop.eup %1787  ;;  %v990_v31 = vadd.f32 %v989_v40, %v926_v22  ;;  %v930_v35 = vpop.permute.xlu0 %929 }
 0x588   : > { %v1208_v57 = vsub.f32 1.0, %v1207_v53  ;;  %v1223_v14 = vmul.f32 %v1786_v1, %v1204_v41  ;;  %v994_v12 = vpop.f32.mrf.mxu3  ;;  %v993_v45 = vadd.f32 %v992_v43, %v930_v35 }
 0x589   : > { %v1006_v4 = vadd.f32 %v990_v31, %v655_v5 }
 0x58a   : > { %v1209_v60 = vmul.f32 %v1784_v46, %v1208_v57  ;;  %v934_v25 = vpop.permute.xlu1 %933 }
 0x58b   : > { %v995_v56 = vadd.f32 %v994_v12, %v934_v25 }
 0x58c   : > { %v1210_v36 = vadd.f32 %v1784_v46, %v1209_v60 }
 0x58d   : > { %v1008_v59 = vadd.f32 %v995_v56, %v660_v55 }
 0x58e   : > { %v1214_v63 = vsel %vm1213_vm10, %v1784_v46, %v1210_v36  ;;  %v1250_v26 = vpop.permute.xlu2 %1249 }
 0x58f   : > { %v1219_v13 = vsel %vm1216_vm2, %v1218_v54, %v1214_v63  ;;  %v1262_v58 = vpop.permute.xlu0 %1261 }
 0x590   : > { %v1224_v9 = vmul.f32 %v1788_v7, %v1219_v13 }
 0x592   : > { %v1235_v8 = vpack.c.bf16 %v1224_v9, %v1223_v14  ;;  %v1254_v51 = vpop.permute.xlu1 %1253 }
 0x594   : > { %1302 = vmatpush.bf16.msrb.mxu3 %v1235_v8 }
 0x596   : > { %v1258_v39 = vpop.permute.xlu2 %1257 }
 0x598   : > { %1303 = vmatpush.bf16.msrb.mxu3 %v1234_v42  ;;  %v658_v42 = vadd.f32 %v2277_v33, %v593_v16 }
 0x59a   : > { %v1007_v48 = vadd.f32 %v993_v45, %v658_v42 }
 0x59b   : > { %1607 = vmatmul.msk.bf16.vlgmr.msrb.gmra.mxu3 %vm620_vm4, %v1638_v20 }
 0x5ab   : > { %1608 = vmatmul.msk.bf16.gmra.mxu3 %vm620_vm4, %v1639_v21 }
 0x5bb   : > { %1609 = vmatmul.msk.bf16.gmra.mxu3 %vm620_vm4, %v1640_v27 }
 0x5cb   : > { %1610 = vmatmul.msk.bf16.gmra.mxu3 %vm620_vm4, %v1641_v38 }
 0x61e   : > { %v1305_v0 = vpop.f32.mrf.mxu3 }
 0x626   : > { %v1306_v15 = vpop.f32.mrf.mxu3 }
 0x62e   : > { %v1308_v18 = vpop.f32.mrf.mxu3 }
 0x636   : > { %v1309_v23 = vpop.f32.mrf.mxu3 }
 0x63e   : > { %v1311_v28 = vpop.f32.mrf.mxu3 }
 0x63f   : > { %v1312_v44 = vadd.f32 %v1311_v28, %v1250_v26 }
 0x641   : > { %v1321_v6 = vadd.f32 %v1312_v44, %v1005_v29 }
 0x643   : > { %v1325_v11 = vmul.f32 %v2092_v49, %v1321_v6 }
 0x645   : > { %1329 = vst [vmem:[%s2315_s29] sm:$0xff] %v1325_v11 }
 0x646   : > { %v1313_v50 = vpop.f32.mrf.mxu3 }
 0x647   : > { %v1314_v30 = vadd.f32 %v1313_v50, %v1254_v51 }
 0x649   : > { %v1322_v37 = vadd.f32 %v1314_v30, %v1006_v4 }
 0x64b   : > { %v1326_v32 = vmul.f32 %v2092_v49, %v1322_v37 }
 0x64d   : > { %1330 = vst [vmem:[%s2315_s29 + $0x8] sm:$0xff] %v1326_v32 }
 0x64e   : > { %v1316_v46 = vpop.f32.mrf.mxu3 }
 0x64f   : > { %v1317_v52 = vadd.f32 %v1316_v46, %v1258_v39 }
 0x651   : > { %v1323_v53 = vadd.f32 %v1317_v52, %v1007_v48 }
 0x653   : > { %v1327_v57 = vmul.f32 %v2092_v49, %v1323_v53 }
 0x655   : > { %1331 = vst [vmem:[%s2315_s29 + $0x10] sm:$0xff] %v1327_v57 }
 0x656   : > { %v1318_v33 = vpop.f32.mrf.mxu3 }
 0x657   : > { %v1319_v60 = vadd.f32 %v1318_v33, %v1262_v58 }
 0x659   : > { %v1324_v62 = vadd.f32 %v1319_v60, %v1008_v59 }
 0x65b   : > { %v1328_v34 = vmul.f32 %v2092_v49, %v1324_v62 }
 0x65d   : > { %1332 = vst [vmem:[%s2315_s29 + $0x18] sm:$0xff] %v1328_v34 }
 0x65e   : > { %1816 = shalt.err (!%p1813_p3)
}
 0x65f   : > { %s1863_s20 = smov 128   ;;  %s1864_s29 = smov 8  }
 0x660   : > { %1647 = dma.vmem_to_hbm [thread:$0]  (%p1938_p5), %s1347_s14, 512, %s1349_s15, %s1334_s25, %s1863_s20, %s1863_s20, %s1864_s29  }
 0x661 PF: > { %p1653_p4 = scmp.ge.s32.totalorder %s1851_s24, 2  ;;  %s1363_s10 = sand.u32 1, %s1839_s21  }
 0x662   : > { %s1364_s28 = scalar_lea.sflag [#allocation3], %s1363_s10 }
 0x663   : > { %p1650_p7 = pnand %p1653_p4, %p1942_p6 }
 0x665   : > { %p1651_p8 = pneg %p1650_p7 }
 0x667   : > { %1834 = dma.done.wait (%p1651_p8), %s1364_s28, 512  }
 0x668   : > { %1836 = vsyncadd (%p1651_p8), %s1364_s28, 4294966784  ;;  %p16_p9 = scmp.ge.s32.totalorder %s1925_s27, 4   ;;  %s2375_s21 = smov %s1843_s22 }
 0x669   : > { %s2376_s22 = smov %s1847_s23  ;;  %s2377_s23 = smov %s1936_s30 }
 0x66a   : > { %s2378_s24 = smov %s1925_s27  ;;  %18 = sbr.rel (!%p16_p9) target bundleno = 3 (0x3), region = 89 }
 0x66f   :  { %1370 = vsyncpa [#allocation3], 1 }
 0x670   :  { %1372 = vsyncpa [#allocation3 + $0x1], 1 }

</bundles_post_ra>
